<compile_context>
chip_gen: v6e
topology: v6e:2x2x1
jax: 0.10.0
libtpu: 0.0.40
codegen_flags: <defaults>
</compile_context>

<pallas_src>
import functools

import jax
import jax.numpy as jnp
from jax.experimental import pallas as pl
from jax.experimental.pallas import tpu as pltpu


def _round_up(n, m):
    return (n + m - 1) // m * m


def _am_kernel(x_ref, mask_ref, w_ref, b_ref, o_ref, q_ref, *, width, ksize, pad):
    # x_ref:    (1, C, HW)   one batch element, original dtype, lane-dense
    # mask_ref: (K, HW)      f32 horizontal-edge masks, one per kernel column
    # w_ref:    (2*K*K,)     SMEM f32, Conv2d(2,1,K) weight in (cin, ky, kx) order
    # b_ref:    (1,)         SMEM f32, conv bias
    # o_ref:    (1, C, HW)   output block
    # q_ref:    (2, QL)      VMEM f32 scratch: flat, vertically zero-padded pooled maps
    C = x_ref.shape[1]
    HW = x_ref.shape[2]
    QL = q_ref.shape[1]
    K2 = ksize * ksize
    halo = pad * width + pad                      # leading zero strip = P*W + P

    # --- channel pooling on the lane-dense block (f32 accumulation, no
    #     persistent f32 copy of the block; mean via static 1/C scale) ---
    avg = jnp.sum(x_ref[0].astype(jnp.float32), axis=0, keepdims=True) * (1.0 / C)
    mx = jnp.max(x_ref[0], axis=0, keepdims=True).astype(jnp.float32)     # (1, HW)

    # --- flat zero-padded pooled maps: zero ONLY the halo strips (the
    #     interior is fully overwritten each step), then one contiguous
    #     interior store per map ---
    for cin in range(2):
        q_ref[cin:cin + 1, 0:halo] = jnp.zeros((1, halo), jnp.float32)
        q_ref[cin:cin + 1, halo + HW:QL] = jnp.zeros((1, QL - halo - HW), jnp.float32)
    q_ref[0:1, halo:halo + HW] = avg
    q_ref[1:2, halo:halo + HW] = mx

    # --- KxK conv as shifted MACs in the flat domain.
    # Tap (cin, ky, kx) at output o reads q_ref[cin, o + ky*W + kx]; vertical
    # padding is handled by the zero halo strips, horizontal edges by the
    # per-kx masks, applied once per (cin, kx) group of ky-taps. ---
    acc = jnp.zeros((1, HW), jnp.float32)
    for cin in range(2):
        for kx in range(ksize):
            partial = jnp.zeros((1, HW), jnp.float32)
            for ky in range(ksize):                       # short fixed trip count
                wk = w_ref[cin * K2 + ky * ksize + kx]
                start = ky * width + kx                   # static slice offset
                partial = partial + wk * q_ref[cin:cin + 1, start:start + HW]
            acc = acc + mask_ref[kx:kx + 1, :] * partial

    attn = jax.nn.sigmoid(acc + b_ref[0])                 # (1, HW) f32

    # --- broadcast multiply in the input dtype (bf16-native on v6e/v7x);
    #     re-reads the original-dtype block instead of a saved f32 copy ---
    o_ref[0] = x_ref[0] * attn.astype(o_ref.dtype)


def am_forward(x, conv_w, conv_b):
    """AM forward: sigmoid(Conv2d(2,1,7,pad=3)([mean_c(x), max_c(x)])) * x.

    x:      (B, C, H, W)
    conv_w: (1, 2, 7, 7)  weight of Conv2d(2, 1, kernel_size=7, padding=3)
    conv_b: (1,)          bias of that conv
    Returns (B, C, H, W) with the same dtype as x.
    """
    B, C, H, W = x.shape
    K = conv_w.shape[-1]
    P = (K - 1) // 2
    HW = H * W

    # Lane-dense layout for the bulk elementwise path.
    x2 = x.reshape(B, C, HW)
    w_flat = conv_w.reshape(-1).astype(jnp.float32)       # (2*K*K,), (cin, ky, kx)
    b_flat = conv_b.reshape(-1).astype(jnp.float32)       # (1,)

    # Horizontal-edge masks for the flat-domain conv: tap column kx is valid
    # at output column c iff 0 <= c + kx - P < W.  Shared across cin and ky.
    col = jnp.arange(HW, dtype=jnp.int32) % W
    masks = jnp.stack(
        [((col >= P - kx) & (col < W + P - kx)).astype(jnp.float32) for kx in range(K)],
        axis=0)                                           # (K, HW)

    # Flat padded pooled-map length: P rows of zeros above/below plus P extra
    # elements of slack on each side so every tap slice stays in bounds.
    QL = _round_up((H + 2 * P) * W + 2 * P, 128)

    # Real, tile-padded, double-buffered VMEM footprint (no guessing):
    lane = lambda n: _round_up(n, 128)
    sub = lambda n: _round_up(n, 8)
    blk_bytes = sub(C) * lane(HW) * x.dtype.itemsize      # one (1, C, HW) block
    mask_bytes = sub(K) * lane(HW) * 4
    scratch_bytes = sub(2) * lane(QL) * 4
    tmp_bytes = 12 * lane(HW) * 4                         # f32 temporaries (acc/attn/pooled/...)
    need = 2 * blk_bytes + 2 * blk_bytes + 2 * mask_bytes + scratch_bytes + tmp_bytes
    vmem_limit = int(min(max(need + (4 << 20), 16 << 20), 48 << 20))   # <=48 MiB for v7x

    out2 = pl.pallas_call(
        functools.partial(_am_kernel, width=W, ksize=K, pad=P),
        out_shape=jax.ShapeDtypeStruct((B, C, HW), x.dtype),
        grid_spec=pltpu.PrefetchScalarGridSpec(
            num_scalar_prefetch=0,
            grid=(B,),                                    # one batch element per step
            in_specs=[
                pl.BlockSpec((1, C, HW), lambda b: (b, 0, 0)),          # x (lane-dense)
                pl.BlockSpec((K, HW), lambda b: (0, 0)),                # edge masks (resident)
                pl.BlockSpec(memory_space=pltpu.MemorySpace.SMEM),      # conv weight
                pl.BlockSpec(memory_space=pltpu.MemorySpace.SMEM),      # conv bias
            ],
            out_specs=pl.BlockSpec((1, C, HW), lambda b: (b, 0, 0)),
            scratch_shapes=[pltpu.VMEM((2, QL), jnp.float32)],
        ),
        compiler_params=pltpu.CompilerParams(
            dimension_semantics=("parallel",),            # batch axis -> both TCs on v7x
            vmem_limit_bytes=vmem_limit,
        ),
    )(x2, masks, w_flat, b_flat)
    return out2.reshape(B, C, H, W)


def _reference(x, conv_w, conv_b):
    # Pure-JAX reference matching the PyTorch AM module.
    avg = jnp.mean(x, axis=1, keepdims=True)
    mx = jnp.max(x, axis=1, keepdims=True)
    stacked = jnp.concatenate([avg, mx], axis=1)                    # (B, 2, H, W)
    conv = jax.lax.conv_general_dilated(
        stacked.astype(jnp.float32), conv_w.astype(jnp.float32),
        window_strides=(1, 1), padding=((3, 3), (3, 3)),
        dimension_numbers=("NCHW", "OIHW", "NCHW"))                 # (B, 1, H, W)
    attn = jax.nn.sigmoid(conv + conv_b.reshape(1, -1, 1, 1))
    return (attn * x).astype(x.dtype)


if __name__ == "__main__":
    B, C, H, W = 2, 4, 16, 16

    key = jax.random.PRNGKey(0)
    k_x, k_w, k_b = jax.random.split(key, 3)

    x = jax.random.normal(k_x, (B, C, H, W), dtype=jnp.float32)
    fan_in = 2 * 7 * 7
    conv_w = jax.random.normal(k_w, (1, 2, 7, 7), dtype=jnp.float32) * (1.0 / fan_in) ** 0.5
    conv_b = jax.random.normal(k_b, (1,), dtype=jnp.float32) * 0.01

    out = am_forward(x, conv_w, conv_b)
    out = jax.block_until_ready(out)

    ref = _reference(x, conv_w, conv_b)
    assert out.shape == (B, C, H, W), out.shape
    max_err = float(jnp.max(jnp.abs(out - ref)))
    assert jnp.allclose(out, ref, atol=1e-4, rtol=1e-4), f"mismatch vs reference: {max_err}"

    print("KERNEL_OK")
</pallas_src>

<mosaic_0001>
module attributes {stable_mosaic.version = 11 : i64} {
  func.func @_am_kernel(%arg0: i32, %arg1: memref<1x4x256xf32, #tpu.memory_space<vmem>>, %arg2: memref<7x256xf32, #tpu.memory_space<vmem>>, %arg3: memref<98xf32, #tpu.memory_space<smem>>, %arg4: memref<1xf32, #tpu.memory_space<smem>>, %arg5: memref<1x4x256xf32, #tpu.memory_space<vmem>>, %arg6: memref<2x384xf32, #tpu.memory_space<vmem>>) attributes {dimension_semantics = [#tpu.dimension_semantics<parallel>], iteration_bounds = array<i64: 2>, scalar_prefetch = 0 : i64, scratch_operands = 1 : i64, tpu.core_type = #tpu.core_type<tc>, window_params = [{transform_indices = @transform_0, window_bounds = array<i64: 1, 4, 256>}, {pipeline_mode = #tpu.pipeline_mode<synchronous>, transform_indices = @transform_1, window_bounds = array<i64: 7, 256>}, {transform_indices = @transform_2, window_bounds = array<i64: 98>}, {transform_indices = @transform_3, window_bounds = array<i64: 1>}, {transform_indices = @transform_4, window_bounds = array<i64: 1, 4, 256>}]} {
    %c0 = arith.constant 0 : index
    %c0_0 = arith.constant 0 : index
    %c0_1 = arith.constant 0 : index
    %0 = vector.load %arg1[%c0, %c0_0, %c0_1] : memref<1x4x256xf32, #tpu.memory_space<vmem>>, vector<1x4x256xf32>
    %1 = vector.shape_cast %0 : vector<1x4x256xf32> to vector<4x256xf32>
    %cst = arith.constant dense<0.000000e+00> : vector<256xf32>
    %2 = vector.multi_reduction <add>, %1, %cst [0] : vector<4x256xf32> to vector<256xf32>
    %3 = vector.shape_cast %2 : vector<256xf32> to vector<1x256xf32>
    %cst_2 = arith.constant 2.500000e-01 : f32
    %4 = vector.broadcast %cst_2 : f32 to vector<1x256xf32>
    %5 = arith.mulf %3, %4 : vector<1x256xf32>
    %c0_3 = arith.constant 0 : index
    %c0_4 = arith.constant 0 : index
    %c0_5 = arith.constant 0 : index
    %6 = vector.load %arg1[%c0_3, %c0_4, %c0_5] : memref<1x4x256xf32, #tpu.memory_space<vmem>>, vector<1x4x256xf32>
    %7 = vector.shape_cast %6 : vector<1x4x256xf32> to vector<4x256xf32>
    %cst_6 = arith.constant dense<0xFF800000> : vector<256xf32>
    %8 = vector.multi_reduction <maximumf>, %7, %cst_6 [0] : vector<4x256xf32> to vector<256xf32>
    %9 = vector.shape_cast %8 : vector<256xf32> to vector<1x256xf32>
    %cst_7 = arith.constant 0.000000e+00 : f32
    %10 = vector.broadcast %cst_7 : f32 to vector<1x51xf32>
    %c0_8 = arith.constant 0 : index
    %c0_9 = arith.constant 0 : index
    %11 = vector.load %arg6[%c0_8, %c0_9] : memref<2x384xf32, #tpu.memory_space<vmem>>, vector<1x51xf32>
    tpu.vector_store %arg6[%c0_8, %c0_9], %10 {strides = array<i32>} : memref<2x384xf32, #tpu.memory_space<vmem>>, vector<1x51xf32>,
    %cst_10 = arith.constant 0.000000e+00 : f32
    %12 = vector.broadcast %cst_10 : f32 to vector<1x77xf32>
    %c0_11 = arith.constant 0 : index
    %c307 = arith.constant 307 : index
    %13 = vector.load %arg6[%c0_11, %c307] : memref<2x384xf32, #tpu.memory_space<vmem>>, vector<1x77xf32>
    tpu.vector_store %arg6[%c0_11, %c307], %12 {strides = array<i32>} : memref<2x384xf32, #tpu.memory_space<vmem>>, vector<1x77xf32>,
    %cst_12 = arith.constant 0.000000e+00 : f32
    %14 = vector.broadcast %cst_12 : f32 to vector<1x51xf32>
    %c1 = arith.constant 1 : index
    %c0_13 = arith.constant 0 : index
    %15 = vector.load %arg6[%c1, %c0_13] : memref<2x384xf32, #tpu.memory_space<vmem>>, vector<1x51xf32>
    tpu.vector_store %arg6[%c1, %c0_13], %14 {strides = array<i32>} : memref<2x384xf32, #tpu.memory_space<vmem>>, vector<1x51xf32>,
    %cst_14 = arith.constant 0.000000e+00 : f32
    %16 = vector.broadcast %cst_14 : f32 to vector<1x77xf32>
    %c1_15 = arith.constant 1 : index
    %c307_16 = arith.constant 307 : index
    %17 = vector.load %arg6[%c1_15, %c307_16] : memref<2x384xf32, #tpu.memory_space<vmem>>, vector<1x77xf32>
    tpu.vector_store %arg6[%c1_15, %c307_16], %16 {strides = array<i32>} : memref<2x384xf32, #tpu.memory_space<vmem>>, vector<1x77xf32>,
    %c0_17 = arith.constant 0 : index
    %c51 = arith.constant 51 : index
    %18 = vector.load %arg6[%c0_17, %c51] : memref<2x384xf32, #tpu.memory_space<vmem>>, vector<1x256xf32>
    tpu.vector_store %arg6[%c0_17, %c51], %5 {strides = array<i32>} : memref<2x384xf32, #tpu.memory_space<vmem>>, vector<1x256xf32>,
    %c1_18 = arith.constant 1 : index
    %c51_19 = arith.constant 51 : index
    %19 = vector.load %arg6[%c1_18, %c51_19] : memref<2x384xf32, #tpu.memory_space<vmem>>, vector<1x256xf32>
    tpu.vector_store %arg6[%c1_18, %c51_19], %9 {strides = array<i32>} : memref<2x384xf32, #tpu.memory_space<vmem>>, vector<1x256xf32>,
    %cst_20 = arith.constant 0.000000e+00 : f32
    %20 = vector.broadcast %cst_20 : f32 to vector<1x256xf32>
    %cst_21 = arith.constant 0.000000e+00 : f32
    %21 = vector.broadcast %cst_21 : f32 to vector<1x256xf32>
    %c0_22 = arith.constant 0 : index
    %22 = memref.load %arg3[%c0_22] : memref<98xf32, #tpu.memory_space<smem>>
    %c0_23 = arith.constant 0 : index
    %c0_24 = arith.constant 0 : index
    %23 = vector.load %arg6[%c0_23, %c0_24] : memref<2x384xf32, #tpu.memory_space<vmem>>, vector<1x256xf32>
    %24 = vector.broadcast %22 : f32 to vector<1x256xf32>
    %25 = arith.mulf %24, %23 : vector<1x256xf32>
    %26 = arith.addf %21, %25 : vector<1x256xf32>
    %c7 = arith.constant 7 : index
    %27 = memref.load %arg3[%c7] : memref<98xf32, #tpu.memory_space<smem>>
    %c0_25 = arith.constant 0 : index
    %c16 = arith.constant 16 : index
    %28 = vector.load %arg6[%c0_25, %c16] : memref<2x384xf32, #tpu.memory_space<vmem>>, vector<1x256xf32>
    %29 = vector.broadcast %27 : f32 to vector<1x256xf32>
    %30 = arith.mulf %29, %28 : vector<1x256xf32>
    %31 = arith.addf %26, %30 : vector<1x256xf32>
    %c14 = arith.constant 14 : index
    %32 = memref.load %arg3[%c14] : memref<98xf32, #tpu.memory_space<smem>>
    %c0_26 = arith.constant 0 : index
    %c32 = arith.constant 32 : index
    %33 = vector.load %arg6[%c0_26, %c32] : memref<2x384xf32, #tpu.memory_space<vmem>>, vector<1x256xf32>
    %34 = vector.broadcast %32 : f32 to vector<1x256xf32>
    %35 = arith.mulf %34, %33 : vector<1x256xf32>
    %36 = arith.addf %31, %35 : vector<1x256xf32>
    %c21 = arith.constant 21 : index
    %37 = memref.load %arg3[%c21] : memref<98xf32, #tpu.memory_space<smem>>
    %c0_27 = arith.constant 0 : index
    %c48 = arith.constant 48 : index
    %38 = vector.load %arg6[%c0_27, %c48] : memref<2x384xf32, #tpu.memory_space<vmem>>, vector<1x256xf32>
    %39 = vector.broadcast %37 : f32 to vector<1x256xf32>
    %40 = arith.mulf %39, %38 : vector<1x256xf32>
    %41 = arith.addf %36, %40 : vector<1x256xf32>
    %c28 = arith.constant 28 : index
    %42 = memref.load %arg3[%c28] : memref<98xf32, #tpu.memory_space<smem>>
    %c0_28 = arith.constant 0 : index
    %c64 = arith.constant 64 : index
    %43 = vector.load %arg6[%c0_28, %c64] : memref<2x384xf32, #tpu.memory_space<vmem>>, vector<1x256xf32>
    %44 = vector.broadcast %42 : f32 to vector<1x256xf32>
    %45 = arith.mulf %44, %43 : vector<1x256xf32>
    %46 = arith.addf %41, %45 : vector<1x256xf32>
    %c35 = arith.constant 35 : index
    %47 = memref.load %arg3[%c35] : memref<98xf32, #tpu.memory_space<smem>>
    %c0_29 = arith.constant 0 : index
    %c80 = arith.constant 80 : index
    %48 = vector.load %arg6[%c0_29, %c80] : memref<2x384xf32, #tpu.memory_space<vmem>>, vector<1x256xf32>
    %49 = vector.broadcast %47 : f32 to vector<1x256xf32>
    %50 = arith.mulf %49, %48 : vector<1x256xf32>
    %51 = arith.addf %46, %50 : vector<1x256xf32>
    %c42 = arith.constant 42 : index
    %52 = memref.load %arg3[%c42] : memref<98xf32, #tpu.memory_space<smem>>
    %c0_30 = arith.constant 0 : index
    %c96 = arith.constant 96 : index
    %53 = vector.load %arg6[%c0_30, %c96] : memref<2x384xf32, #tpu.memory_space<vmem>>, vector<1x256xf32>
    %54 = vector.broadcast %52 : f32 to vector<1x256xf32>
    %55 = arith.mulf %54, %53 : vector<1x256xf32>
    %56 = arith.addf %51, %55 : vector<1x256xf32>
    %c0_31 = arith.constant 0 : index
    %c0_32 = arith.constant 0 : index
    %57 = vector.load %arg2[%c0_31, %c0_32] : memref<7x256xf32, #tpu.memory_space<vmem>>, vector<1x256xf32>
    %58 = arith.mulf %57, %56 : vector<1x256xf32>
    %59 = arith.addf %20, %58 : vector<1x256xf32>
    %cst_33 = arith.constant 0.000000e+00 : f32
    %60 = vector.broadcast %cst_33 : f32 to vector<1x256xf32>
    %c1_34 = arith.constant 1 : index
    %61 = memref.load %arg3[%c1_34] : memref<98xf32, #tpu.memory_space<smem>>
    %c0_35 = arith.constant 0 : index
    %c1_36 = arith.constant 1 : index
    %62 = vector.load %arg6[%c0_35, %c1_36] : memref<2x384xf32, #tpu.memory_space<vmem>>, vector<1x256xf32>
    %63 = vector.broadcast %61 : f32 to vector<1x256xf32>
    %64 = arith.mulf %63, %62 : vector<1x256xf32>
    %65 = arith.addf %60, %64 : vector<1x256xf32>
    %c8 = arith.constant 8 : index
    %66 = memref.load %arg3[%c8] : memref<98xf32, #tpu.memory_space<smem>>
    %c0_37 = arith.constant 0 : index
    %c17 = arith.constant 17 : index
    %67 = vector.load %arg6[%c0_37, %c17] : memref<2x384xf32, #tpu.memory_space<vmem>>, vector<1x256xf32>
    %68 = vector.broadcast %66 : f32 to vector<1x256xf32>
    %69 = arith.mulf %68, %67 : vector<1x256xf32>
    %70 = arith.addf %65, %69 : vector<1x256xf32>
    %c15 = arith.constant 15 : index
    %71 = memref.load %arg3[%c15] : memref<98xf32, #tpu.memory_space<smem>>
    %c0_38 = arith.constant 0 : index
    %c33 = arith.constant 33 : index
    %72 = vector.load %arg6[%c0_38, %c33] : memref<2x384xf32, #tpu.memory_space<vmem>>, vector<1x256xf32>
    %73 = vector.broadcast %71 : f32 to vector<1x256xf32>
    %74 = arith.mulf %73, %72 : vector<1x256xf32>
    %75 = arith.addf %70, %74 : vector<1x256xf32>
    %c22 = arith.constant 22 : index
    %76 = memref.load %arg3[%c22] : memref<98xf32, #tpu.memory_space<smem>>
    %c0_39 = arith.constant 0 : index
    %c49 = arith.constant 49 : index
    %77 = vector.load %arg6[%c0_39, %c49] : memref<2x384xf32, #tpu.memory_space<vmem>>, vector<1x256xf32>
    %78 = vector.broadcast %76 : f32 to vector<1x256xf32>
    %79 = arith.mulf %78, %77 : vector<1x256xf32>
    %80 = arith.addf %75, %79 : vector<1x256xf32>
    %c29 = arith.constant 29 : index
    %81 = memref.load %arg3[%c29] : memref<98xf32, #tpu.memory_space<smem>>
    %c0_40 = arith.constant 0 : index
    %c65 = arith.constant 65 : index
    %82 = vector.load %arg6[%c0_40, %c65] : memref<2x384xf32, #tpu.memory_space<vmem>>, vector<1x256xf32>
    %83 = vector.broadcast %81 : f32 to vector<1x256xf32>
    %84 = arith.mulf %83, %82 : vector<1x256xf32>
    %85 = arith.addf %80, %84 : vector<1x256xf32>
    %c36 = arith.constant 36 : index
    %86 = memref.load %arg3[%c36] : memref<98xf32, #tpu.memory_space<smem>>
    %c0_41 = arith.constant 0 : index
    %c81 = arith.constant 81 : index
    %87 = vector.load %arg6[%c0_41, %c81] : memref<2x384xf32, #tpu.memory_space<vmem>>, vector<1x256xf32>
    %88 = vector.broadcast %86 : f32 to vector<1x256xf32>
    %89 = arith.mulf %88, %87 : vector<1x256xf32>
    %90 = arith.addf %85, %89 : vector<1x256xf32>
    %c43 = arith.constant 43 : index
    %91 = memref.load %arg3[%c43] : memref<98xf32, #tpu.memory_space<smem>>
    %c0_42 = arith.constant 0 : index
    %c97 = arith.constant 97 : index
    %92 = vector.load %arg6[%c0_42, %c97] : memref<2x384xf32, #tpu.memory_space<vmem>>, vector<1x256xf32>
    %93 = vector.broadcast %91 : f32 to vector<1x256xf32>
    %94 = arith.mulf %93, %92 : vector<1x256xf32>
    %95 = arith.addf %90, %94 : vector<1x256xf32>
    %c1_43 = arith.constant 1 : index
    %c0_44 = arith.constant 0 : index
    %96 = vector.load %arg2[%c1_43, %c0_44] : memref<7x256xf32, #tpu.memory_space<vmem>>, vector<1x256xf32>
    %97 = arith.mulf %96, %95 : vector<1x256xf32>
    %98 = arith.addf %59, %97 : vector<1x256xf32>
    %cst_45 = arith.constant 0.000000e+00 : f32
    %99 = vector.broadcast %cst_45 : f32 to vector<1x256xf32>
    %c2 = arith.constant 2 : index
    %100 = memref.load %arg3[%c2] : memref<98xf32, #tpu.memory_space<smem>>
    %c0_46 = arith.constant 0 : index
    %c2_47 = arith.constant 2 : index
    %101 = vector.load %arg6[%c0_46, %c2_47] : memref<2x384xf32, #tpu.memory_space<vmem>>, vector<1x256xf32>
    %102 = vector.broadcast %100 : f32 to vector<1x256xf32>
    %103 = arith.mulf %102, %101 : vector<1x256xf32>
    %104 = arith.addf %99, %103 : vector<1x256xf32>
    %c9 = arith.constant 9 : index
    %105 = memref.load %arg3[%c9] : memref<98xf32, #tpu.memory_space<smem>>
    %c0_48 = arith.constant 0 : index
    %c18 = arith.constant 18 : index
    %106 = vector.load %arg6[%c0_48, %c18] : memref<2x384xf32, #tpu.memory_space<vmem>>, vector<1x256xf32>
    %107 = vector.broadcast %105 : f32 to vector<1x256xf32>
    %108 = arith.mulf %107, %106 : vector<1x256xf32>
    %109 = arith.addf %104, %108 : vector<1x256xf32>
    %c16_49 = arith.constant 16 : index
    %110 = memref.load %arg3[%c16_49] : memref<98xf32, #tpu.memory_space<smem>>
    %c0_50 = arith.constant 0 : index
    %c34 = arith.constant 34 : index
    %111 = vector.load %arg6[%c0_50, %c34] : memref<2x384xf32, #tpu.memory_space<vmem>>, vector<1x256xf32>
    %112 = vector.broadcast %110 : f32 to vector<1x256xf32>
    %113 = arith.mulf %112, %111 : vector<1x256xf32>
    %114 = arith.addf %109, %113 : vector<1x256xf32>
    %c23 = arith.constant 23 : index
    %115 = memref.load %arg3[%c23] : memref<98xf32, #tpu.memory_space<smem>>
    %c0_51 = arith.constant 0 : index
    %c50 = arith.constant 50 : index
    %116 = vector.load %arg6[%c0_51, %c50] : memref<2x384xf32, #tpu.memory_space<vmem>>, vector<1x256xf32>
    %117 = vector.broadcast %115 : f32 to vector<1x256xf32>
    %118 = arith.mulf %117, %116 : vector<1x256xf32>
    %119 = arith.addf %114, %118 : vector<1x256xf32>
    %c30 = arith.constant 30 : index
    %120 = memref.load %arg3[%c30] : memref<98xf32, #tpu.memory_space<smem>>
    %c0_52 = arith.constant 0 : index
    %c66 = arith.constant 66 : index
    %121 = vector.load %arg6[%c0_52, %c66] : memref<2x384xf32, #tpu.memory_space<vmem>>, vector<1x256xf32>
    %122 = vector.broadcast %120 : f32 to vector<1x256xf32>
    %123 = arith.mulf %122, %121 : vector<1x256xf32>
    %124 = arith.addf %119, %123 : vector<1x256xf32>
    %c37 = arith.constant 37 : index
    %125 = memref.load %arg3[%c37] : memref<98xf32, #tpu.memory_space<smem>>
    %c0_53 = arith.constant 0 : index
    %c82 = arith.constant 82 : index
    %126 = vector.load %arg6[%c0_53, %c82] : memref<2x384xf32, #tpu.memory_space<vmem>>, vector<1x256xf32>
    %127 = vector.broadcast %125 : f32 to vector<1x256xf32>
    %128 = arith.mulf %127, %126 : vector<1x256xf32>
    %129 = arith.addf %124, %128 : vector<1x256xf32>
    %c44 = arith.constant 44 : index
    %130 = memref.load %arg3[%c44] : memref<98xf32, #tpu.memory_space<smem>>
    %c0_54 = arith.constant 0 : index
    %c98 = arith.constant 98 : index
    %131 = vector.load %arg6[%c0_54, %c98] : memref<2x384xf32, #tpu.memory_space<vmem>>, vector<1x256xf32>
    %132 = vector.broadcast %130 : f32 to vector<1x256xf32>
    %133 = arith.mulf %132, %131 : vector<1x256xf32>
    %134 = arith.addf %129, %133 : vector<1x256xf32>
    %c2_55 = arith.constant 2 : index
    %c0_56 = arith.constant 0 : index
    %135 = vector.load %arg2[%c2_55, %c0_56] : memref<7x256xf32, #tpu.memory_space<vmem>>, vector<1x256xf32>
    %136 = arith.mulf %135, %134 : vector<1x256xf32>
    %137 = arith.addf %98, %136 : vector<1x256xf32>
    %cst_57 = arith.constant 0.000000e+00 : f32
    %138 = vector.broadcast %cst_57 : f32 to vector<1x256xf32>
    %c3 = arith.constant 3 : index
    %139 = memref.load %arg3[%c3] : memref<98xf32, #tpu.memory_space<smem>>
    %c0_58 = arith.constant 0 : index
    %c3_59 = arith.constant 3 : index
    %140 = vector.load %arg6[%c0_58, %c3_59] : memref<2x384xf32, #tpu.memory_space<vmem>>, vector<1x256xf32>
    %141 = vector.broadcast %139 : f32 to vector<1x256xf32>
    %142 = arith.mulf %141, %140 : vector<1x256xf32>
    %143 = arith.addf %138, %142 : vector<1x256xf32>
    %c10 = arith.constant 10 : index
    %144 = memref.load %arg3[%c10] : memref<98xf32, #tpu.memory_space<smem>>
    %c0_60 = arith.constant 0 : index
    %c19 = arith.constant 19 : index
    %145 = vector.load %arg6[%c0_60, %c19] : memref<2x384xf32, #tpu.memory_space<vmem>>, vector<1x256xf32>
    %146 = vector.broadcast %144 : f32 to vector<1x256xf32>
    %147 = arith.mulf %146, %145 : vector<1x256xf32>
    %148 = arith.addf %143, %147 : vector<1x256xf32>
    %c17_61 = arith.constant 17 : index
    %149 = memref.load %arg3[%c17_61] : memref<98xf32, #tpu.memory_space<smem>>
    %c0_62 = arith.constant 0 : index
    %c35_63 = arith.constant 35 : index
    %150 = vector.load %arg6[%c0_62, %c35_63] : memref<2x384xf32, #tpu.memory_space<vmem>>, vector<1x256xf32>
    %151 = vector.broadcast %149 : f32 to vector<1x256xf32>
    %152 = arith.mulf %151, %150 : vector<1x256xf32>
    %153 = arith.addf %148, %152 : vector<1x256xf32>
    %c24 = arith.constant 24 : index
    %154 = memref.load %arg3[%c24] : memref<98xf32, #tpu.memory_space<smem>>
    %c0_64 = arith.constant 0 : index
    %c51_65 = arith.constant 51 : index
    %155 = vector.load %arg6[%c0_64, %c51_65] : memref<2x384xf32, #tpu.memory_space<vmem>>, vector<1x256xf32>
    %156 = vector.broadcast %154 : f32 to vector<1x256xf32>
    %157 = arith.mulf %156, %155 : vector<1x256xf32>
    %158 = arith.addf %153, %157 : vector<1x256xf32>
    %c31 = arith.constant 31 : index
    %159 = memref.load %arg3[%c31] : memref<98xf32, #tpu.memory_space<smem>>
    %c0_66 = arith.constant 0 : index
    %c67 = arith.constant 67 : index
    %160 = vector.load %arg6[%c0_66, %c67] : memref<2x384xf32, #tpu.memory_space<vmem>>, vector<1x256xf32>
    %161 = vector.broadcast %159 : f32 to vector<1x256xf32>
    %162 = arith.mulf %161, %160 : vector<1x256xf32>
    %163 = arith.addf %158, %162 : vector<1x256xf32>
    %c38 = arith.constant 38 : index
    %164 = memref.load %arg3[%c38] : memref<98xf32, #tpu.memory_space<smem>>
    %c0_67 = arith.constant 0 : index
    %c83 = arith.constant 83 : index
    %165 = vector.load %arg6[%c0_67, %c83] : memref<2x384xf32, #tpu.memory_space<vmem>>, vector<1x256xf32>
    %166 = vector.broadcast %164 : f32 to vector<1x256xf32>
    %167 = arith.mulf %166, %165 : vector<1x256xf32>
    %168 = arith.addf %163, %167 : vector<1x256xf32>
    %c45 = arith.constant 45 : index
    %169 = memref.load %arg3[%c45] : memref<98xf32, #tpu.memory_space<smem>>
    %c0_68 = arith.constant 0 : index
    %c99 = arith.constant 99 : index
    %170 = vector.load %arg6[%c0_68, %c99] : memref<2x384xf32, #tpu.memory_space<vmem>>, vector<1x256xf32>
    %171 = vector.broadcast %169 : f32 to vector<1x256xf32>
    %172 = arith.mulf %171, %170 : vector<1x256xf32>
    %173 = arith.addf %168, %172 : vector<1x256xf32>
    %c3_69 = arith.constant 3 : index
    %c0_70 = arith.constant 0 : index
    %174 = vector.load %arg2[%c3_69, %c0_70] : memref<7x256xf32, #tpu.memory_space<vmem>>, vector<1x256xf32>
    %175 = arith.mulf %174, %173 : vector<1x256xf32>
    %176 = arith.addf %137, %175 : vector<1x256xf32>
    %cst_71 = arith.constant 0.000000e+00 : f32
    %177 = vector.broadcast %cst_71 : f32 to vector<1x256xf32>
    %c4 = arith.constant 4 : index
    %178 = memref.load %arg3[%c4] : memref<98xf32, #tpu.memory_space<smem>>
    %c0_72 = arith.constant 0 : index
    %c4_73 = arith.constant 4 : index
    %179 = vector.load %arg6[%c0_72, %c4_73] : memref<2x384xf32, #tpu.memory_space<vmem>>, vector<1x256xf32>
    %180 = vector.broadcast %178 : f32 to vector<1x256xf32>
    %181 = arith.mulf %180, %179 : vector<1x256xf32>
    %182 = arith.addf %177, %181 : vector<1x256xf32>
    %c11 = arith.constant 11 : index
    %183 = memref.load %arg3[%c11] : memref<98xf32, #tpu.memory_space<smem>>
    %c0_74 = arith.constant 0 : index
    %c20 = arith.constant 20 : index
    %184 = vector.load %arg6[%c0_74, %c20] : memref<2x384xf32, #tpu.memory_space<vmem>>, vector<1x256xf32>
    %185 = vector.broadcast %183 : f32 to vector<1x256xf32>
    %186 = arith.mulf %185, %184 : vector<1x256xf32>
    %187 = arith.addf %182, %186 : vector<1x256xf32>
    %c18_75 = arith.constant 18 : index
    %188 = memref.load %arg3[%c18_75] : memref<98xf32, #tpu.memory_space<smem>>
    %c0_76 = arith.constant 0 : index
    %c36_77 = arith.constant 36 : index
    %189 = vector.load %arg6[%c0_76, %c36_77] : memref<2x384xf32, #tpu.memory_space<vmem>>, vector<1x256xf32>
    %190 = vector.broadcast %188 : f32 to vector<1x256xf32>
    %191 = arith.mulf %190, %189 : vector<1x256xf32>
    %192 = arith.addf %187, %191 : vector<1x256xf32>
    %c25 = arith.constant 25 : index
    %193 = memref.load %arg3[%c25] : memref<98xf32, #tpu.memory_space<smem>>
    %c0_78 = arith.constant 0 : index
    %c52 = arith.constant 52 : index
    %194 = vector.load %arg6[%c0_78, %c52] : memref<2x384xf32, #tpu.memory_space<vmem>>, vector<1x256xf32>
    %195 = vector.broadcast %193 : f32 to vector<1x256xf32>
    %196 = arith.mulf %195, %194 : vector<1x256xf32>
    %197 = arith.addf %192, %196 : vector<1x256xf32>
    %c32_79 = arith.constant 32 : index
    %198 = memref.load %arg3[%c32_79] : memref<98xf32, #tpu.memory_space<smem>>
    %c0_80 = arith.constant 0 : index
    %c68 = arith.constant 68 : index
    %199 = vector.load %arg6[%c0_80, %c68] : memref<2x384xf32, #tpu.memory_space<vmem>>, vector<1x256xf32>
    %200 = vector.broadcast %198 : f32 to vector<1x256xf32>
    %201 = arith.mulf %200, %199 : vector<1x256xf32>
    %202 = arith.addf %197, %201 : vector<1x256xf32>
    %c39 = arith.constant 39 : index
    %203 = memref.load %arg3[%c39] : memref<98xf32, #tpu.memory_space<smem>>
    %c0_81 = arith.constant 0 : index
    %c84 = arith.constant 84 : index
    %204 = vector.load %arg6[%c0_81, %c84] : memref<2x384xf32, #tpu.memory_space<vmem>>, vector<1x256xf32>
    %205 = vector.broadcast %203 : f32 to vector<1x256xf32>
    %206 = arith.mulf %205, %204 : vector<1x256xf32>
    %207 = arith.addf %202, %206 : vector<1x256xf32>
    %c46 = arith.constant 46 : index
    %208 = memref.load %arg3[%c46] : memref<98xf32, #tpu.memory_space<smem>>
    %c0_82 = arith.constant 0 : index
    %c100 = arith.constant 100 : index
    %209 = vector.load %arg6[%c0_82, %c100] : memref<2x384xf32, #tpu.memory_space<vmem>>, vector<1x256xf32>
    %210 = vector.broadcast %208 : f32 to vector<1x256xf32>
    %211 = arith.mulf %210, %209 : vector<1x256xf32>
    %212 = arith.addf %207, %211 : vector<1x256xf32>
    %c4_83 = arith.constant 4 : index
    %c0_84 = arith.constant 0 : index
    %213 = vector.load %arg2[%c4_83, %c0_84] : memref<7x256xf32, #tpu.memory_space<vmem>>, vector<1x256xf32>
    %214 = arith.mulf %213, %212 : vector<1x256xf32>
    %215 = arith.addf %176, %214 : vector<1x256xf32>
    %cst_85 = arith.constant 0.000000e+00 : f32
    %216 = vector.broadcast %cst_85 : f32 to vector<1x256xf32>
    %c5 = arith.constant 5 : index
    %217 = memref.load %arg3[%c5] : memref<98xf32, #tpu.memory_space<smem>>
    %c0_86 = arith.constant 0 : index
    %c5_87 = arith.constant 5 : index
    %218 = vector.load %arg6[%c0_86, %c5_87] : memref<2x384xf32, #tpu.memory_space<vmem>>, vector<1x256xf32>
    %219 = vector.broadcast %217 : f32 to vector<1x256xf32>
    %220 = arith.mulf %219, %218 : vector<1x256xf32>
    %221 = arith.addf %216, %220 : vector<1x256xf32>
    %c12 = arith.constant 12 : index
    %222 = memref.load %arg3[%c12] : memref<98xf32, #tpu.memory_space<smem>>
    %c0_88 = arith.constant 0 : index
    %c21_89 = arith.constant 21 : index
    %223 = vector.load %arg6[%c0_88, %c21_89] : memref<2x384xf32, #tpu.memory_space<vmem>>, vector<1x256xf32>
    %224 = vector.broadcast %222 : f32 to vector<1x256xf32>
    %225 = arith.mulf %224, %223 : vector<1x256xf32>
    %226 = arith.addf %221, %225 : vector<1x256xf32>
    %c19_90 = arith.constant 19 : index
    %227 = memref.load %arg3[%c19_90] : memref<98xf32, #tpu.memory_space<smem>>
    %c0_91 = arith.constant 0 : index
    %c37_92 = arith.constant 37 : index
    %228 = vector.load %arg6[%c0_91, %c37_92] : memref<2x384xf32, #tpu.memory_space<vmem>>, vector<1x256xf32>
    %229 = vector.broadcast %227 : f32 to vector<1x256xf32>
    %230 = arith.mulf %229, %228 : vector<1x256xf32>
    %231 = arith.addf %226, %230 : vector<1x256xf32>
    %c26 = arith.constant 26 : index
    %232 = memref.load %arg3[%c26] : memref<98xf32, #tpu.memory_space<smem>>
    %c0_93 = arith.constant 0 : index
    %c53 = arith.constant 53 : index
    %233 = vector.load %arg6[%c0_93, %c53] : memref<2x384xf32, #tpu.memory_space<vmem>>, vector<1x256xf32>
    %234 = vector.broadcast %232 : f32 to vector<1x256xf32>
    %235 = arith.mulf %234, %233 : vector<1x256xf32>
    %236 = arith.addf %231, %235 : vector<1x256xf32>
    %c33_94 = arith.constant 33 : index
    %237 = memref.load %arg3[%c33_94] : memref<98xf32, #tpu.memory_space<smem>>
    %c0_95 = arith.constant 0 : index
    %c69 = arith.constant 69 : index
    %238 = vector.load %arg6[%c0_95, %c69] : memref<2x384xf32, #tpu.memory_space<vmem>>, vector<1x256xf32>
    %239 = vector.broadcast %237 : f32 to vector<1x256xf32>
    %240 = arith.mulf %239, %238 : vector<1x256xf32>
    %241 = arith.addf %236, %240 : vector<1x256xf32>
    %c40 = arith.constant 40 : index
    %242 = memref.load %arg3[%c40] : memref<98xf32, #tpu.memory_space<smem>>
    %c0_96 = arith.constant 0 : index
    %c85 = arith.constant 85 : index
    %243 = vector.load %arg6[%c0_96, %c85] : memref<2x384xf32, #tpu.memory_space<vmem>>, vector<1x256xf32>
    %244 = vector.broadcast %242 : f32 to vector<1x256xf32>
    %245 = arith.mulf %244, %243 : vector<1x256xf32>
    %246 = arith.addf %241, %245 : vector<1x256xf32>
    %c47 = arith.constant 47 : index
    %247 = memref.load %arg3[%c47] : memref<98xf32, #tpu.memory_space<smem>>
    %c0_97 = arith.constant 0 : index
    %c101 = arith.constant 101 : index
    %248 = vector.load %arg6[%c0_97, %c101] : memref<2x384xf32, #tpu.memory_space<vmem>>, vector<1x256xf32>
    %249 = vector.broadcast %247 : f32 to vector<1x256xf32>
    %250 = arith.mulf %249, %248 : vector<1x256xf32>
    %251 = arith.addf %246, %250 : vector<1x256xf32>
    %c5_98 = arith.constant 5 : index
    %c0_99 = arith.constant 0 : index
    %252 = vector.load %arg2[%c5_98, %c0_99] : memref<7x256xf32, #tpu.memory_space<vmem>>, vector<1x256xf32>
    %253 = arith.mulf %252, %251 : vector<1x256xf32>
    %254 = arith.addf %215, %253 : vector<1x256xf32>
    %cst_100 = arith.constant 0.000000e+00 : f32
    %255 = vector.broadcast %cst_100 : f32 to vector<1x256xf32>
    %c6 = arith.constant 6 : index
    %256 = memref.load %arg3[%c6] : memref<98xf32, #tpu.memory_space<smem>>
    %c0_101 = arith.constant 0 : index
    %c6_102 = arith.constant 6 : index
    %257 = vector.load %arg6[%c0_101, %c6_102] : memref<2x384xf32, #tpu.memory_space<vmem>>, vector<1x256xf32>
    %258 = vector.broadcast %256 : f32 to vector<1x256xf32>
    %259 = arith.mulf %258, %257 : vector<1x256xf32>
    %260 = arith.addf %255, %259 : vector<1x256xf32>
    %c13 = arith.constant 13 : index
    %261 = memref.load %arg3[%c13] : memref<98xf32, #tpu.memory_space<smem>>
    %c0_103 = arith.constant 0 : index
    %c22_104 = arith.constant 22 : index
    %262 = vector.load %arg6[%c0_103, %c22_104] : memref<2x384xf32, #tpu.memory_space<vmem>>, vector<1x256xf32>
    %263 = vector.broadcast %261 : f32 to vector<1x256xf32>
    %264 = arith.mulf %263, %262 : vector<1x256xf32>
    %265 = arith.addf %260, %264 : vector<1x256xf32>
    %c20_105 = arith.constant 20 : index
    %266 = memref.load %arg3[%c20_105] : memref<98xf32, #tpu.memory_space<smem>>
    %c0_106 = arith.constant 0 : index
    %c38_107 = arith.constant 38 : index
    %267 = vector.load %arg6[%c0_106, %c38_107] : memref<2x384xf32, #tpu.memory_space<vmem>>, vector<1x256xf32>
    %268 = vector.broadcast %266 : f32 to vector<1x256xf32>
    %269 = arith.mulf %268, %267 : vector<1x256xf32>
    %270 = arith.addf %265, %269 : vector<1x256xf32>
    %c27 = arith.constant 27 : index
    %271 = memref.load %arg3[%c27] : memref<98xf32, #tpu.memory_space<smem>>
    %c0_108 = arith.constant 0 : index
    %c54 = arith.constant 54 : index
    %272 = vector.load %arg6[%c0_108, %c54] : memref<2x384xf32, #tpu.memory_space<vmem>>, vector<1x256xf32>
    %273 = vector.broadcast %271 : f32 to vector<1x256xf32>
    %274 = arith.mulf %273, %272 : vector<1x256xf32>
    %275 = arith.addf %270, %274 : vector<1x256xf32>
    %c34_109 = arith.constant 34 : index
    %276 = memref.load %arg3[%c34_109] : memref<98xf32, #tpu.memory_space<smem>>
    %c0_110 = arith.constant 0 : index
    %c70 = arith.constant 70 : index
    %277 = vector.load %arg6[%c0_110, %c70] : memref<2x384xf32, #tpu.memory_space<vmem>>, vector<1x256xf32>
    %278 = vector.broadcast %276 : f32 to vector<1x256xf32>
    %279 = arith.mulf %278, %277 : vector<1x256xf32>
    %280 = arith.addf %275, %279 : vector<1x256xf32>
    %c41 = arith.constant 41 : index
    %281 = memref.load %arg3[%c41] : memref<98xf32, #tpu.memory_space<smem>>
    %c0_111 = arith.constant 0 : index
    %c86 = arith.constant 86 : index
    %282 = vector.load %arg6[%c0_111, %c86] : memref<2x384xf32, #tpu.memory_space<vmem>>, vector<1x256xf32>
    %283 = vector.broadcast %281 : f32 to vector<1x256xf32>
    %284 = arith.mulf %283, %282 : vector<1x256xf32>
    %285 = arith.addf %280, %284 : vector<1x256xf32>
    %c48_112 = arith.constant 48 : index
    %286 = memref.load %arg3[%c48_112] : memref<98xf32, #tpu.memory_space<smem>>
    %c0_113 = arith.constant 0 : index
    %c102 = arith.constant 102 : index
    %287 = vector.load %arg6[%c0_113, %c102] : memref<2x384xf32, #tpu.memory_space<vmem>>, vector<1x256xf32>
    %288 = vector.broadcast %286 : f32 to vector<1x256xf32>
    %289 = arith.mulf %288, %287 : vector<1x256xf32>
    %290 = arith.addf %285, %289 : vector<1x256xf32>
    %c6_114 = arith.constant 6 : index
    %c0_115 = arith.constant 0 : index
    %291 = vector.load %arg2[%c6_114, %c0_115] : memref<7x256xf32, #tpu.memory_space<vmem>>, vector<1x256xf32>
    %292 = arith.mulf %291, %290 : vector<1x256xf32>
    %293 = arith.addf %254, %292 : vector<1x256xf32>
    %cst_116 = arith.constant 0.000000e+00 : f32
    %294 = vector.broadcast %cst_116 : f32 to vector<1x256xf32>
    %c49_117 = arith.constant 49 : index
    %295 = memref.load %arg3[%c49_117] : memref<98xf32, #tpu.memory_space<smem>>
    %c1_118 = arith.constant 1 : index
    %c0_119 = arith.constant 0 : index
    %296 = vector.load %arg6[%c1_118, %c0_119] : memref<2x384xf32, #tpu.memory_space<vmem>>, vector<1x256xf32>
    %297 = vector.broadcast %295 : f32 to vector<1x256xf32>
    %298 = arith.mulf %297, %296 : vector<1x256xf32>
    %299 = arith.addf %294, %298 : vector<1x256xf32>
    %c56 = arith.constant 56 : index
    %300 = memref.load %arg3[%c56] : memref<98xf32, #tpu.memory_space<smem>>
    %c1_120 = arith.constant 1 : index
    %c16_121 = arith.constant 16 : index
    %301 = vector.load %arg6[%c1_120, %c16_121] : memref<2x384xf32, #tpu.memory_space<vmem>>, vector<1x256xf32>
    %302 = vector.broadcast %300 : f32 to vector<1x256xf32>
    %303 = arith.mulf %302, %301 : vector<1x256xf32>
    %304 = arith.addf %299, %303 : vector<1x256xf32>
    %c63 = arith.constant 63 : index
    %305 = memref.load %arg3[%c63] : memref<98xf32, #tpu.memory_space<smem>>
    %c1_122 = arith.constant 1 : index
    %c32_123 = arith.constant 32 : index
    %306 = vector.load %arg6[%c1_122, %c32_123] : memref<2x384xf32, #tpu.memory_space<vmem>>, vector<1x256xf32>
    %307 = vector.broadcast %305 : f32 to vector<1x256xf32>
    %308 = arith.mulf %307, %306 : vector<1x256xf32>
    %309 = arith.addf %304, %308 : vector<1x256xf32>
    %c70_124 = arith.constant 70 : index
    %310 = memref.load %arg3[%c70_124] : memref<98xf32, #tpu.memory_space<smem>>
    %c1_125 = arith.constant 1 : index
    %c48_126 = arith.constant 48 : index
    %311 = vector.load %arg6[%c1_125, %c48_126] : memref<2x384xf32, #tpu.memory_space<vmem>>, vector<1x256xf32>
    %312 = vector.broadcast %310 : f32 to vector<1x256xf32>
    %313 = arith.mulf %312, %311 : vector<1x256xf32>
    %314 = arith.addf %309, %313 : vector<1x256xf32>
    %c77 = arith.constant 77 : index
    %315 = memref.load %arg3[%c77] : memref<98xf32, #tpu.memory_space<smem>>
    %c1_127 = arith.constant 1 : index
    %c64_128 = arith.constant 64 : index
    %316 = vector.load %arg6[%c1_127, %c64_128] : memref<2x384xf32, #tpu.memory_space<vmem>>, vector<1x256xf32>
    %317 = vector.broadcast %315 : f32 to vector<1x256xf32>
    %318 = arith.mulf %317, %316 : vector<1x256xf32>
    %319 = arith.addf %314, %318 : vector<1x256xf32>
    %c84_129 = arith.constant 84 : index
    %320 = memref.load %arg3[%c84_129] : memref<98xf32, #tpu.memory_space<smem>>
    %c1_130 = arith.constant 1 : index
    %c80_131 = arith.constant 80 : index
    %321 = vector.load %arg6[%c1_130, %c80_131] : memref<2x384xf32, #tpu.memory_space<vmem>>, vector<1x256xf32>
    %322 = vector.broadcast %320 : f32 to vector<1x256xf32>
    %323 = arith.mulf %322, %321 : vector<1x256xf32>
    %324 = arith.addf %319, %323 : vector<1x256xf32>
    %c91 = arith.constant 91 : index
    %325 = memref.load %arg3[%c91] : memref<98xf32, #tpu.memory_space<smem>>
    %c1_132 = arith.constant 1 : index
    %c96_133 = arith.constant 96 : index
    %326 = vector.load %arg6[%c1_132, %c96_133] : memref<2x384xf32, #tpu.memory_space<vmem>>, vector<1x256xf32>
    %327 = vector.broadcast %325 : f32 to vector<1x256xf32>
    %328 = arith.mulf %327, %326 : vector<1x256xf32>
    %329 = arith.addf %324, %328 : vector<1x256xf32>
    %c0_134 = arith.constant 0 : index
    %c0_135 = arith.constant 0 : index
    %330 = vector.load %arg2[%c0_134, %c0_135] : memref<7x256xf32, #tpu.memory_space<vmem>>, vector<1x256xf32>
    %331 = arith.mulf %330, %329 : vector<1x256xf32>
    %332 = arith.addf %293, %331 : vector<1x256xf32>
    %cst_136 = arith.constant 0.000000e+00 : f32
    %333 = vector.broadcast %cst_136 : f32 to vector<1x256xf32>
    %c50_137 = arith.constant 50 : index
    %334 = memref.load %arg3[%c50_137] : memref<98xf32, #tpu.memory_space<smem>>
    %c1_138 = arith.constant 1 : index
    %c1_139 = arith.constant 1 : index
    %335 = vector.load %arg6[%c1_138, %c1_139] : memref<2x384xf32, #tpu.memory_space<vmem>>, vector<1x256xf32>
    %336 = vector.broadcast %334 : f32 to vector<1x256xf32>
    %337 = arith.mulf %336, %335 : vector<1x256xf32>
    %338 = arith.addf %333, %337 : vector<1x256xf32>
    %c57 = arith.constant 57 : index
    %339 = memref.load %arg3[%c57] : memref<98xf32, #tpu.memory_space<smem>>
    %c1_140 = arith.constant 1 : index
    %c17_141 = arith.constant 17 : index
    %340 = vector.load %arg6[%c1_140, %c17_141] : memref<2x384xf32, #tpu.memory_space<vmem>>, vector<1x256xf32>
    %341 = vector.broadcast %339 : f32 to vector<1x256xf32>
    %342 = arith.mulf %341, %340 : vector<1x256xf32>
    %343 = arith.addf %338, %342 : vector<1x256xf32>
    %c64_142 = arith.constant 64 : index
    %344 = memref.load %arg3[%c64_142] : memref<98xf32, #tpu.memory_space<smem>>
    %c1_143 = arith.constant 1 : index
    %c33_144 = arith.constant 33 : index
    %345 = vector.load %arg6[%c1_143, %c33_144] : memref<2x384xf32, #tpu.memory_space<vmem>>, vector<1x256xf32>
    %346 = vector.broadcast %344 : f32 to vector<1x256xf32>
    %347 = arith.mulf %346, %345 : vector<1x256xf32>
    %348 = arith.addf %343, %347 : vector<1x256xf32>
    %c71 = arith.constant 71 : index
    %349 = memref.load %arg3[%c71] : memref<98xf32, #tpu.memory_space<smem>>
    %c1_145 = arith.constant 1 : index
    %c49_146 = arith.constant 49 : index
    %350 = vector.load %arg6[%c1_145, %c49_146] : memref<2x384xf32, #tpu.memory_space<vmem>>, vector<1x256xf32>
    %351 = vector.broadcast %349 : f32 to vector<1x256xf32>
    %352 = arith.mulf %351, %350 : vector<1x256xf32>
    %353 = arith.addf %348, %352 : vector<1x256xf32>
    %c78 = arith.constant 78 : index
    %354 = memref.load %arg3[%c78] : memref<98xf32, #tpu.memory_space<smem>>
    %c1_147 = arith.constant 1 : index
    %c65_148 = arith.constant 65 : index
    %355 = vector.load %arg6[%c1_147, %c65_148] : memref<2x384xf32, #tpu.memory_space<vmem>>, vector<1x256xf32>
    %356 = vector.broadcast %354 : f32 to vector<1x256xf32>
    %357 = arith.mulf %356, %355 : vector<1x256xf32>
    %358 = arith.addf %353, %357 : vector<1x256xf32>
    %c85_149 = arith.constant 85 : index
    %359 = memref.load %arg3[%c85_149] : memref<98xf32, #tpu.memory_space<smem>>
    %c1_150 = arith.constant 1 : index
    %c81_151 = arith.constant 81 : index
    %360 = vector.load %arg6[%c1_150, %c81_151] : memref<2x384xf32, #tpu.memory_space<vmem>>, vector<1x256xf32>
    %361 = vector.broadcast %359 : f32 to vector<1x256xf32>
    %362 = arith.mulf %361, %360 : vector<1x256xf32>
    %363 = arith.addf %358, %362 : vector<1x256xf32>
    %c92 = arith.constant 92 : index
    %364 = memref.load %arg3[%c92] : memref<98xf32, #tpu.memory_space<smem>>
    %c1_152 = arith.constant 1 : index
    %c97_153 = arith.constant 97 : index
    %365 = vector.load %arg6[%c1_152, %c97_153] : memref<2x384xf32, #tpu.memory_space<vmem>>, vector<1x256xf32>
    %366 = vector.broadcast %364 : f32 to vector<1x256xf32>
    %367 = arith.mulf %366, %365 : vector<1x256xf32>
    %368 = arith.addf %363, %367 : vector<1x256xf32>
    %c1_154 = arith.constant 1 : index
    %c0_155 = arith.constant 0 : index
    %369 = vector.load %arg2[%c1_154, %c0_155] : memref<7x256xf32, #tpu.memory_space<vmem>>, vector<1x256xf32>
    %370 = arith.mulf %369, %368 : vector<1x256xf32>
    %371 = arith.addf %332, %370 : vector<1x256xf32>
    %cst_156 = arith.constant 0.000000e+00 : f32
    %372 = vector.broadcast %cst_156 : f32 to vector<1x256xf32>
    %c51_157 = arith.constant 51 : index
    %373 = memref.load %arg3[%c51_157] : memref<98xf32, #tpu.memory_space<smem>>
    %c1_158 = arith.constant 1 : index
    %c2_159 = arith.constant 2 : index
    %374 = vector.load %arg6[%c1_158, %c2_159] : memref<2x384xf32, #tpu.memory_space<vmem>>, vector<1x256xf32>
    %375 = vector.broadcast %373 : f32 to vector<1x256xf32>
    %376 = arith.mulf %375, %374 : vector<1x256xf32>
    %377 = arith.addf %372, %376 : vector<1x256xf32>
    %c58 = arith.constant 58 : index
    %378 = memref.load %arg3[%c58] : memref<98xf32, #tpu.memory_space<smem>>
    %c1_160 = arith.constant 1 : index
    %c18_161 = arith.constant 18 : index
    %379 = vector.load %arg6[%c1_160, %c18_161] : memref<2x384xf32, #tpu.memory_space<vmem>>, vector<1x256xf32>
    %380 = vector.broadcast %378 : f32 to vector<1x256xf32>
    %381 = arith.mulf %380, %379 : vector<1x256xf32>
    %382 = arith.addf %377, %381 : vector<1x256xf32>
    %c65_162 = arith.constant 65 : index
    %383 = memref.load %arg3[%c65_162] : memref<98xf32, #tpu.memory_space<smem>>
    %c1_163 = arith.constant 1 : index
    %c34_164 = arith.constant 34 : index
    %384 = vector.load %arg6[%c1_163, %c34_164] : memref<2x384xf32, #tpu.memory_space<vmem>>, vector<1x256xf32>
    %385 = vector.broadcast %383 : f32 to vector<1x256xf32>
    %386 = arith.mulf %385, %384 : vector<1x256xf32>
    %387 = arith.addf %382, %386 : vector<1x256xf32>
    %c72 = arith.constant 72 : index
    %388 = memref.load %arg3[%c72] : memref<98xf32, #tpu.memory_space<smem>>
    %c1_165 = arith.constant 1 : index
    %c50_166 = arith.constant 50 : index
    %389 = vector.load %arg6[%c1_165, %c50_166] : memref<2x384xf32, #tpu.memory_space<vmem>>, vector<1x256xf32>
    %390 = vector.broadcast %388 : f32 to vector<1x256xf32>
    %391 = arith.mulf %390, %389 : vector<1x256xf32>
    %392 = arith.addf %387, %391 : vector<1x256xf32>
    %c79 = arith.constant 79 : index
    %393 = memref.load %arg3[%c79] : memref<98xf32, #tpu.memory_space<smem>>
    %c1_167 = arith.constant 1 : index
    %c66_168 = arith.constant 66 : index
    %394 = vector.load %arg6[%c1_167, %c66_168] : memref<2x384xf32, #tpu.memory_space<vmem>>, vector<1x256xf32>
    %395 = vector.broadcast %393 : f32 to vector<1x256xf32>
    %396 = arith.mulf %395, %394 : vector<1x256xf32>
    %397 = arith.addf %392, %396 : vector<1x256xf32>
    %c86_169 = arith.constant 86 : index
    %398 = memref.load %arg3[%c86_169] : memref<98xf32, #tpu.memory_space<smem>>
    %c1_170 = arith.constant 1 : index
    %c82_171 = arith.constant 82 : index
    %399 = vector.load %arg6[%c1_170, %c82_171] : memref<2x384xf32, #tpu.memory_space<vmem>>, vector<1x256xf32>
    %400 = vector.broadcast %398 : f32 to vector<1x256xf32>
    %401 = arith.mulf %400, %399 : vector<1x256xf32>
    %402 = arith.addf %397, %401 : vector<1x256xf32>
    %c93 = arith.constant 93 : index
    %403 = memref.load %arg3[%c93] : memref<98xf32, #tpu.memory_space<smem>>
    %c1_172 = arith.constant 1 : index
    %c98_173 = arith.constant 98 : index
    %404 = vector.load %arg6[%c1_172, %c98_173] : memref<2x384xf32, #tpu.memory_space<vmem>>, vector<1x256xf32>
    %405 = vector.broadcast %403 : f32 to vector<1x256xf32>
    %406 = arith.mulf %405, %404 : vector<1x256xf32>
    %407 = arith.addf %402, %406 : vector<1x256xf32>
    %c2_174 = arith.constant 2 : index
    %c0_175 = arith.constant 0 : index
    %408 = vector.load %arg2[%c2_174, %c0_175] : memref<7x256xf32, #tpu.memory_space<vmem>>, vector<1x256xf32>
    %409 = arith.mulf %408, %407 : vector<1x256xf32>
    %410 = arith.addf %371, %409 : vector<1x256xf32>
    %cst_176 = arith.constant 0.000000e+00 : f32
    %411 = vector.broadcast %cst_176 : f32 to vector<1x256xf32>
    %c52_177 = arith.constant 52 : index
    %412 = memref.load %arg3[%c52_177] : memref<98xf32, #tpu.memory_space<smem>>
    %c1_178 = arith.constant 1 : index
    %c3_179 = arith.constant 3 : index
    %413 = vector.load %arg6[%c1_178, %c3_179] : memref<2x384xf32, #tpu.memory_space<vmem>>, vector<1x256xf32>
    %414 = vector.broadcast %412 : f32 to vector<1x256xf32>
    %415 = arith.mulf %414, %413 : vector<1x256xf32>
    %416 = arith.addf %411, %415 : vector<1x256xf32>
    %c59 = arith.constant 59 : index
    %417 = memref.load %arg3[%c59] : memref<98xf32, #tpu.memory_space<smem>>
    %c1_180 = arith.constant 1 : index
    %c19_181 = arith.constant 19 : index
    %418 = vector.load %arg6[%c1_180, %c19_181] : memref<2x384xf32, #tpu.memory_space<vmem>>, vector<1x256xf32>
    %419 = vector.broadcast %417 : f32 to vector<1x256xf32>
    %420 = arith.mulf %419, %418 : vector<1x256xf32>
    %421 = arith.addf %416, %420 : vector<1x256xf32>
    %c66_182 = arith.constant 66 : index
    %422 = memref.load %arg3[%c66_182] : memref<98xf32, #tpu.memory_space<smem>>
    %c1_183 = arith.constant 1 : index
    %c35_184 = arith.constant 35 : index
    %423 = vector.load %arg6[%c1_183, %c35_184] : memref<2x384xf32, #tpu.memory_space<vmem>>, vector<1x256xf32>
    %424 = vector.broadcast %422 : f32 to vector<1x256xf32>
    %425 = arith.mulf %424, %423 : vector<1x256xf32>
    %426 = arith.addf %421, %425 : vector<1x256xf32>
    %c73 = arith.constant 73 : index
    %427 = memref.load %arg3[%c73] : memref<98xf32, #tpu.memory_space<smem>>
    %c1_185 = arith.constant 1 : index
    %c51_186 = arith.constant 51 : index
    %428 = vector.load %arg6[%c1_185, %c51_186] : memref<2x384xf32, #tpu.memory_space<vmem>>, vector<1x256xf32>
    %429 = vector.broadcast %427 : f32 to vector<1x256xf32>
    %430 = arith.mulf %429, %428 : vector<1x256xf32>
    %431 = arith.addf %426, %430 : vector<1x256xf32>
    %c80_187 = arith.constant 80 : index
    %432 = memref.load %arg3[%c80_187] : memref<98xf32, #tpu.memory_space<smem>>
    %c1_188 = arith.constant 1 : index
    %c67_189 = arith.constant 67 : index
    %433 = vector.load %arg6[%c1_188, %c67_189] : memref<2x384xf32, #tpu.memory_space<vmem>>, vector<1x256xf32>
    %434 = vector.broadcast %432 : f32 to vector<1x256xf32>
    %435 = arith.mulf %434, %433 : vector<1x256xf32>
    %436 = arith.addf %431, %435 : vector<1x256xf32>
    %c87 = arith.constant 87 : index
    %437 = memref.load %arg3[%c87] : memref<98xf32, #tpu.memory_space<smem>>
    %c1_190 = arith.constant 1 : index
    %c83_191 = arith.constant 83 : index
    %438 = vector.load %arg6[%c1_190, %c83_191] : memref<2x384xf32, #tpu.memory_space<vmem>>, vector<1x256xf32>
    %439 = vector.broadcast %437 : f32 to vector<1x256xf32>
    %440 = arith.mulf %439, %438 : vector<1x256xf32>
    %441 = arith.addf %436, %440 : vector<1x256xf32>
    %c94 = arith.constant 94 : index
    %442 = memref.load %arg3[%c94] : memref<98xf32, #tpu.memory_space<smem>>
    %c1_192 = arith.constant 1 : index
    %c99_193 = arith.constant 99 : index
    %443 = vector.load %arg6[%c1_192, %c99_193] : memref<2x384xf32, #tpu.memory_space<vmem>>, vector<1x256xf32>
    %444 = vector.broadcast %442 : f32 to vector<1x256xf32>
    %445 = arith.mulf %444, %443 : vector<1x256xf32>
    %446 = arith.addf %441, %445 : vector<1x256xf32>
    %c3_194 = arith.constant 3 : index
    %c0_195 = arith.constant 0 : index
    %447 = vector.load %arg2[%c3_194, %c0_195] : memref<7x256xf32, #tpu.memory_space<vmem>>, vector<1x256xf32>
    %448 = arith.mulf %447, %446 : vector<1x256xf32>
    %449 = arith.addf %410, %448 : vector<1x256xf32>
    %cst_196 = arith.constant 0.000000e+00 : f32
    %450 = vector.broadcast %cst_196 : f32 to vector<1x256xf32>
    %c53_197 = arith.constant 53 : index
    %451 = memref.load %arg3[%c53_197] : memref<98xf32, #tpu.memory_space<smem>>
    %c1_198 = arith.constant 1 : index
    %c4_199 = arith.constant 4 : index
    %452 = vector.load %arg6[%c1_198, %c4_199] : memref<2x384xf32, #tpu.memory_space<vmem>>, vector<1x256xf32>
    %453 = vector.broadcast %451 : f32 to vector<1x256xf32>
    %454 = arith.mulf %453, %452 : vector<1x256xf32>
    %455 = arith.addf %450, %454 : vector<1x256xf32>
    %c60 = arith.constant 60 : index
    %456 = memref.load %arg3[%c60] : memref<98xf32, #tpu.memory_space<smem>>
    %c1_200 = arith.constant 1 : index
    %c20_201 = arith.constant 20 : index
    %457 = vector.load %arg6[%c1_200, %c20_201] : memref<2x384xf32, #tpu.memory_space<vmem>>, vector<1x256xf32>
    %458 = vector.broadcast %456 : f32 to vector<1x256xf32>
    %459 = arith.mulf %458, %457 : vector<1x256xf32>
    %460 = arith.addf %455, %459 : vector<1x256xf32>
    %c67_202 = arith.constant 67 : index
    %461 = memref.load %arg3[%c67_202] : memref<98xf32, #tpu.memory_space<smem>>
    %c1_203 = arith.constant 1 : index
    %c36_204 = arith.constant 36 : index
    %462 = vector.load %arg6[%c1_203, %c36_204] : memref<2x384xf32, #tpu.memory_space<vmem>>, vector<1x256xf32>
    %463 = vector.broadcast %461 : f32 to vector<1x256xf32>
    %464 = arith.mulf %463, %462 : vector<1x256xf32>
    %465 = arith.addf %460, %464 : vector<1x256xf32>
    %c74 = arith.constant 74 : index
    %466 = memref.load %arg3[%c74] : memref<98xf32, #tpu.memory_space<smem>>
    %c1_205 = arith.constant 1 : index
    %c52_206 = arith.constant 52 : index
    %467 = vector.load %arg6[%c1_205, %c52_206] : memref<2x384xf32, #tpu.memory_space<vmem>>, vector<1x256xf32>
    %468 = vector.broadcast %466 : f32 to vector<1x256xf32>
    %469 = arith.mulf %468, %467 : vector<1x256xf32>
    %470 = arith.addf %465, %469 : vector<1x256xf32>
    %c81_207 = arith.constant 81 : index
    %471 = memref.load %arg3[%c81_207] : memref<98xf32, #tpu.memory_space<smem>>
    %c1_208 = arith.constant 1 : index
    %c68_209 = arith.constant 68 : index
    %472 = vector.load %arg6[%c1_208, %c68_209] : memref<2x384xf32, #tpu.memory_space<vmem>>, vector<1x256xf32>
    %473 = vector.broadcast %471 : f32 to vector<1x256xf32>
    %474 = arith.mulf %473, %472 : vector<1x256xf32>
    %475 = arith.addf %470, %474 : vector<1x256xf32>
    %c88 = arith.constant 88 : index
    %476 = memref.load %arg3[%c88] : memref<98xf32, #tpu.memory_space<smem>>
    %c1_210 = arith.constant 1 : index
    %c84_211 = arith.constant 84 : index
    %477 = vector.load %arg6[%c1_210, %c84_211] : memref<2x384xf32, #tpu.memory_space<vmem>>, vector<1x256xf32>
    %478 = vector.broadcast %476 : f32 to vector<1x256xf32>
    %479 = arith.mulf %478, %477 : vector<1x256xf32>
    %480 = arith.addf %475, %479 : vector<1x256xf32>
    %c95 = arith.constant 95 : index
    %481 = memref.load %arg3[%c95] : memref<98xf32, #tpu.memory_space<smem>>
    %c1_212 = arith.constant 1 : index
    %c100_213 = arith.constant 100 : index
    %482 = vector.load %arg6[%c1_212, %c100_213] : memref<2x384xf32, #tpu.memory_space<vmem>>, vector<1x256xf32>
    %483 = vector.broadcast %481 : f32 to vector<1x256xf32>
    %484 = arith.mulf %483, %482 : vector<1x256xf32>
    %485 = arith.addf %480, %484 : vector<1x256xf32>
    %c4_214 = arith.constant 4 : index
    %c0_215 = arith.constant 0 : index
    %486 = vector.load %arg2[%c4_214, %c0_215] : memref<7x256xf32, #tpu.memory_space<vmem>>, vector<1x256xf32>
    %487 = arith.mulf %486, %485 : vector<1x256xf32>
    %488 = arith.addf %449, %487 : vector<1x256xf32>
    %cst_216 = arith.constant 0.000000e+00 : f32
    %489 = vector.broadcast %cst_216 : f32 to vector<1x256xf32>
    %c54_217 = arith.constant 54 : index
    %490 = memref.load %arg3[%c54_217] : memref<98xf32, #tpu.memory_space<smem>>
    %c1_218 = arith.constant 1 : index
    %c5_219 = arith.constant 5 : index
    %491 = vector.load %arg6[%c1_218, %c5_219] : memref<2x384xf32, #tpu.memory_space<vmem>>, vector<1x256xf32>
    %492 = vector.broadcast %490 : f32 to vector<1x256xf32>
    %493 = arith.mulf %492, %491 : vector<1x256xf32>
    %494 = arith.addf %489, %493 : vector<1x256xf32>
    %c61 = arith.constant 61 : index
    %495 = memref.load %arg3[%c61] : memref<98xf32, #tpu.memory_space<smem>>
    %c1_220 = arith.constant 1 : index
    %c21_221 = arith.constant 21 : index
    %496 = vector.load %arg6[%c1_220, %c21_221] : memref<2x384xf32, #tpu.memory_space<vmem>>, vector<1x256xf32>
    %497 = vector.broadcast %495 : f32 to vector<1x256xf32>
    %498 = arith.mulf %497, %496 : vector<1x256xf32>
    %499 = arith.addf %494, %498 : vector<1x256xf32>
    %c68_222 = arith.constant 68 : index
    %500 = memref.load %arg3[%c68_222] : memref<98xf32, #tpu.memory_space<smem>>
    %c1_223 = arith.constant 1 : index
    %c37_224 = arith.constant 37 : index
    %501 = vector.load %arg6[%c1_223, %c37_224] : memref<2x384xf32, #tpu.memory_space<vmem>>, vector<1x256xf32>
    %502 = vector.broadcast %500 : f32 to vector<1x256xf32>
    %503 = arith.mulf %502, %501 : vector<1x256xf32>
    %504 = arith.addf %499, %503 : vector<1x256xf32>
    %c75 = arith.constant 75 : index
    %505 = memref.load %arg3[%c75] : memref<98xf32, #tpu.memory_space<smem>>
    %c1_225 = arith.constant 1 : index
    %c53_226 = arith.constant 53 : index
    %506 = vector.load %arg6[%c1_225, %c53_226] : memref<2x384xf32, #tpu.memory_space<vmem>>, vector<1x256xf32>
    %507 = vector.broadcast %505 : f32 to vector<1x256xf32>
    %508 = arith.mulf %507, %506 : vector<1x256xf32>
    %509 = arith.addf %504, %508 : vector<1x256xf32>
    %c82_227 = arith.constant 82 : index
    %510 = memref.load %arg3[%c82_227] : memref<98xf32, #tpu.memory_space<smem>>
    %c1_228 = arith.constant 1 : index
    %c69_229 = arith.constant 69 : index
    %511 = vector.load %arg6[%c1_228, %c69_229] : memref<2x384xf32, #tpu.memory_space<vmem>>, vector<1x256xf32>
    %512 = vector.broadcast %510 : f32 to vector<1x256xf32>
    %513 = arith.mulf %512, %511 : vector<1x256xf32>
    %514 = arith.addf %509, %513 : vector<1x256xf32>
    %c89 = arith.constant 89 : index
    %515 = memref.load %arg3[%c89] : memref<98xf32, #tpu.memory_space<smem>>
    %c1_230 = arith.constant 1 : index
    %c85_231 = arith.constant 85 : index
    %516 = vector.load %arg6[%c1_230, %c85_231] : memref<2x384xf32, #tpu.memory_space<vmem>>, vector<1x256xf32>
    %517 = vector.broadcast %515 : f32 to vector<1x256xf32>
    %518 = arith.mulf %517, %516 : vector<1x256xf32>
    %519 = arith.addf %514, %518 : vector<1x256xf32>
    %c96_232 = arith.constant 96 : index
    %520 = memref.load %arg3[%c96_232] : memref<98xf32, #tpu.memory_space<smem>>
    %c1_233 = arith.constant 1 : index
    %c101_234 = arith.constant 101 : index
    %521 = vector.load %arg6[%c1_233, %c101_234] : memref<2x384xf32, #tpu.memory_space<vmem>>, vector<1x256xf32>
    %522 = vector.broadcast %520 : f32 to vector<1x256xf32>
    %523 = arith.mulf %522, %521 : vector<1x256xf32>
    %524 = arith.addf %519, %523 : vector<1x256xf32>
    %c5_235 = arith.constant 5 : index
    %c0_236 = arith.constant 0 : index
    %525 = vector.load %arg2[%c5_235, %c0_236] : memref<7x256xf32, #tpu.memory_space<vmem>>, vector<1x256xf32>
    %526 = arith.mulf %525, %524 : vector<1x256xf32>
    %527 = arith.addf %488, %526 : vector<1x256xf32>
    %cst_237 = arith.constant 0.000000e+00 : f32
    %528 = vector.broadcast %cst_237 : f32 to vector<1x256xf32>
    %c55 = arith.constant 55 : index
    %529 = memref.load %arg3[%c55] : memref<98xf32, #tpu.memory_space<smem>>
    %c1_238 = arith.constant 1 : index
    %c6_239 = arith.constant 6 : index
    %530 = vector.load %arg6[%c1_238, %c6_239] : memref<2x384xf32, #tpu.memory_space<vmem>>, vector<1x256xf32>
    %531 = vector.broadcast %529 : f32 to vector<1x256xf32>
    %532 = arith.mulf %531, %530 : vector<1x256xf32>
    %533 = arith.addf %528, %532 : vector<1x256xf32>
    %c62 = arith.constant 62 : index
    %534 = memref.load %arg3[%c62] : memref<98xf32, #tpu.memory_space<smem>>
    %c1_240 = arith.constant 1 : index
    %c22_241 = arith.constant 22 : index
    %535 = vector.load %arg6[%c1_240, %c22_241] : memref<2x384xf32, #tpu.memory_space<vmem>>, vector<1x256xf32>
    %536 = vector.broadcast %534 : f32 to vector<1x256xf32>
    %537 = arith.mulf %536, %535 : vector<1x256xf32>
    %538 = arith.addf %533, %537 : vector<1x256xf32>
    %c69_242 = arith.constant 69 : index
    %539 = memref.load %arg3[%c69_242] : memref<98xf32, #tpu.memory_space<smem>>
    %c1_243 = arith.constant 1 : index
    %c38_244 = arith.constant 38 : index
    %540 = vector.load %arg6[%c1_243, %c38_244] : memref<2x384xf32, #tpu.memory_space<vmem>>, vector<1x256xf32>
    %541 = vector.broadcast %539 : f32 to vector<1x256xf32>
    %542 = arith.mulf %541, %540 : vector<1x256xf32>
    %543 = arith.addf %538, %542 : vector<1x256xf32>
    %c76 = arith.constant 76 : index
    %544 = memref.load %arg3[%c76] : memref<98xf32, #tpu.memory_space<smem>>
    %c1_245 = arith.constant 1 : index
    %c54_246 = arith.constant 54 : index
    %545 = vector.load %arg6[%c1_245, %c54_246] : memref<2x384xf32, #tpu.memory_space<vmem>>, vector<1x256xf32>
    %546 = vector.broadcast %544 : f32 to vector<1x256xf32>
    %547 = arith.mulf %546, %545 : vector<1x256xf32>
    %548 = arith.addf %543, %547 : vector<1x256xf32>
    %c83_247 = arith.constant 83 : index
    %549 = memref.load %arg3[%c83_247] : memref<98xf32, #tpu.memory_space<smem>>
    %c1_248 = arith.constant 1 : index
    %c70_249 = arith.constant 70 : index
    %550 = vector.load %arg6[%c1_248, %c70_249] : memref<2x384xf32, #tpu.memory_space<vmem>>, vector<1x256xf32>
    %551 = vector.broadcast %549 : f32 to vector<1x256xf32>
    %552 = arith.mulf %551, %550 : vector<1x256xf32>
    %553 = arith.addf %548, %552 : vector<1x256xf32>
    %c90 = arith.constant 90 : index
    %554 = memref.load %arg3[%c90] : memref<98xf32, #tpu.memory_space<smem>>
    %c1_250 = arith.constant 1 : index
    %c86_251 = arith.constant 86 : index
    %555 = vector.load %arg6[%c1_250, %c86_251] : memref<2x384xf32, #tpu.memory_space<vmem>>, vector<1x256xf32>
    %556 = vector.broadcast %554 : f32 to vector<1x256xf32>
    %557 = arith.mulf %556, %555 : vector<1x256xf32>
    %558 = arith.addf %553, %557 : vector<1x256xf32>
    %c97_252 = arith.constant 97 : index
    %559 = memref.load %arg3[%c97_252] : memref<98xf32, #tpu.memory_space<smem>>
    %c1_253 = arith.constant 1 : index
    %c102_254 = arith.constant 102 : index
    %560 = vector.load %arg6[%c1_253, %c102_254] : memref<2x384xf32, #tpu.memory_space<vmem>>, vector<1x256xf32>
    %561 = vector.broadcast %559 : f32 to vector<1x256xf32>
    %562 = arith.mulf %561, %560 : vector<1x256xf32>
    %563 = arith.addf %558, %562 : vector<1x256xf32>
    %c6_255 = arith.constant 6 : index
    %c0_256 = arith.constant 0 : index
    %564 = vector.load %arg2[%c6_255, %c0_256] : memref<7x256xf32, #tpu.memory_space<vmem>>, vector<1x256xf32>
    %565 = arith.mulf %564, %563 : vector<1x256xf32>
    %566 = arith.addf %527, %565 : vector<1x256xf32>
    %c0_257 = arith.constant 0 : index
    %567 = memref.load %arg4[%c0_257] : memref<1xf32, #tpu.memory_space<smem>>
    %568 = vector.broadcast %567 : f32 to vector<1x256xf32>
    %569 = arith.addf %566, %568 : vector<1x256xf32>
    %570 = arith.negf %569 : vector<1x256xf32>
    %571 = math.exp %570 : vector<1x256xf32>
    %cst_258 = arith.constant 1.000000e+00 : f32
    %572 = vector.broadcast %cst_258 : f32 to vector<1x256xf32>
    %573 = arith.addf %572, %571 : vector<1x256xf32>
    %574 = arith.divf %572, %573 : vector<1x256xf32>
    %c0_259 = arith.constant 0 : index
    %c0_260 = arith.constant 0 : index
    %c0_261 = arith.constant 0 : index
    %575 = vector.load %arg1[%c0_259, %c0_260, %c0_261] : memref<1x4x256xf32, #tpu.memory_space<vmem>>, vector<1x4x256xf32>
    %576 = vector.shape_cast %575 : vector<1x4x256xf32> to vector<4x256xf32>
    %577 = vector.broadcast %574 : vector<1x256xf32> to vector<4x256xf32>
    %578 = arith.mulf %576, %577 : vector<4x256xf32>
    %c0_262 = arith.constant 0 : index
    %c0_263 = arith.constant 0 : index
    %c0_264 = arith.constant 0 : index
    %579 = vector.load %arg5[%c0_262, %c0_263, %c0_264] : memref<1x4x256xf32, #tpu.memory_space<vmem>>, vector<1x4x256xf32>
    %580 = vector.shape_cast %579 : vector<1x4x256xf32> to vector<4x256xf32>
    %581 = vector.shape_cast %578 : vector<4x256xf32> to vector<1x4x256xf32>
    tpu.vector_store %arg5[%c0_262, %c0_263, %c0_264], %581 {strides = array<i32>} : memref<1x4x256xf32, #tpu.memory_space<vmem>>, vector<1x4x256xf32>,
    return
  }
  func.func @transform_0(%arg0: i32) -> (i32, i32, i32) {
    %c0_i32 = arith.constant 0 : i32
    %c0_i32_0 = arith.constant 0 : i32
    %c0_i32_1 = arith.constant 0 : i32
    return %arg0, %c0_i32, %c0_i32_0 : i32, i32, i32
  }
  func.func @transform_1(%arg0: i32) -> (i32, i32) {
    %c0_i32 = arith.constant 0 : i32
    %c0_i32_0 = arith.constant 0 : i32
    %c0_i32_1 = arith.constant 0 : i32
    return %c0_i32, %c0_i32_0 : i32, i32
  }
  func.func @transform_2(%arg0: i32) -> i32 {
    %c0_i32 = arith.constant 0 : i32
    %c0_i32_0 = arith.constant 0 : i32
    return %c0_i32 : i32
  }
  func.func @transform_3(%arg0: i32) -> i32 {
    %c0_i32 = arith.constant 0 : i32
    %c0_i32_0 = arith.constant 0 : i32
    return %c0_i32 : i32
  }
  func.func @transform_4(%arg0: i32) -> (i32, i32, i32) {
    %c0_i32 = arith.constant 0 : i32
    %c0_i32_0 = arith.constant 0 : i32
    %c0_i32_1 = arith.constant 0 : i32
    return %arg0, %c0_i32, %c0_i32_0 : i32, i32, i32
  }
}

</mosaic_0001>

<bundles_post_ra>
// kernel: tpu_custom_call.1
= control target key start
LH: loop header
LB: loop body
LE: loop exit
PB: predicated region body
PF: predicated region fallthrough
CT: control target
= control target key end

     0   :  { %s2532_s0 = inlined_call_operand.hbm [shape: f32[2,4,256], index: 0, kind: input, shape index: {}]   ;;  %s2533_s1 = inlined_call_operand.hbm [shape: f32[7,256], index: 1, kind: input, shape index: {}]   ;;  %s2534_s2 = inlined_call_operand.vmem [shape: f32[98], index: 2, kind: input, shape index: {}]   ;;  %s2535_s3 = inlined_call_operand.<no memory space> [shape: f32[1], index: 3, kind: input, shape index: {}]   ;;  %s2536_s4 = inlined_call_operand.hbm [shape: f32[2,4,256], index: 4, kind: output, shape index: {}]  }
   0x1   :  { %9 = sst [smem:[#allocation3]] %s2535_s3 }
   0x2   :  { %10 = vsyncpa [#allocation5], 0 }
   0x3   :  { %12 = vsyncpa [#allocation5 + $0x1], 0 }
   0x4   :  { %13 = vsyncpa [#allocation9], 0 }
   0x5   :  { %14 = vsyncpa [#allocation7], 0 }
   0x6   :  { %15 = vsyncpa [#allocation6], 0 }
   0x7   :  { %17 = vsyncpa [#allocation6 + $0x1], 0  ;;  %s1886_s17 = smov 0   ;;  %s1888_s18 = smov 0  }
   0x8   :  { %s1890_s19 = smov 0   ;;  %s1892_s20 = smov 0  }
   0x9 LB: > { %s1907_s3 = sadd.s32 4294967295, %s1837_s20   ;;  %s1491_s21 = sadd.s32 4294967294, %s1837_s20   ;;  %s1837_s20 = sphi %s1892_s20, %s2564_s20   ;;  %s1833_s19 = sphi %s1890_s19, %s2563_s19   ;;  %s1829_s18 = sphi %s1888_s18, %s2562_s18   ;;  %s1825_s17 = sphi %s1886_s17, %s2561_s17  }
   0xa   : > { %p43_p0 = scmp.ne.s32.totalorder %s1829_s18, %s1825_s17  ;;  %p2537_p1 = scmp.eq.s32.totalorder %s1907_s3, 0 }
   0xb   : > { %p136_p3 = scmp.eq.s32.totalorder %s1491_s21, 1  ;;  %p1492_p5 = scmp.ge.s32.totalorder %s1837_s20, 1 }
   0xc   : > { %p1916_p4 = por %p2537_p1, %p43_p0  ;;  %p143_p7 = scmp.lt.s32.totalorder %s1837_s20, 3 }
   0xd   : > { %p1921_p6 = por %p136_p3, %p43_p0  ;;  %s1839_s25 = smov [#allocation8]  }
   0xe   : > { %s2541_s22 = scalar_select %p1916_p4, 1, 0 }
   0xf   : > { %s2542_s23 = scalar_select %p1921_p6, 1, 0 }
  0x10   : > { %p1926_p8 = pnand %p1492_p5, %p143_p7  ;;  %s156_s26 = sshll.u32 %s1839_s25, 4  ;;  %s157_s26 = int_to_ptr.vmem [resolvable:$true] %s156_s26 }
  0x11   : > { %s167_s29 = sshll.u32 %s2534_s2, 4  ;;  %s1943_s5 = sadd.s32 1, %s1837_s20   ;;  %s168_s29 = int_to_ptr.vmem [resolvable:$true] %s167_s29 }
  0x12   : > { %s2543_s24 = scalar_select %p1926_p8, 1, 0 }
  0x13   : > { %p1621_p10 = pneg %p1926_p8  ;;  %s27_s6 = ssub.s32 %s1837_s20, %s1943_s5 }
  0x14   : > { %s1707_s7 = scalar_lea.vmem %s157_s26, 256  ;;  %p1715_p5 = scmp.lt.s32.totalorder %s157_s26, %s157_s26 }
  0x15   : > { %p1938_p11 = pnand %p1621_p10, %p2537_p1  ;;  %p1708_p13 = scmp.ne.s32.totalorder %s157_s26, %s1707_s7 }
  0x16   : > { %p1716_p7 = scmp.lt.s32.totalorder %s1707_s7, %s1707_s7 }
  0x17   : > { %p1698_p12 = pneg %p1938_p11 }
  0x18   : > { %p1717_p10 = por %p1716_p7, %p1715_p5 }
  0x19   : > { %p1710_p0 = pnand %p1708_p13, %p1698_p12 }
  0x1b   : > { %p1711_p3 = pneg %p1710_p0 }
  0x1d   : > { %p1718_p9 = pnand %p1717_p10, %p1711_p3 }
  0x1f   : > { %1721 = shalt.err (!%p1718_p9)
}
  0x20   : > { %1624 = dma.hbm_to_vmem [thread:$0]  (!%p1938_p11), %s2533_s1, 256, %s157_s26, [#allocation9]  }
  0x21   : > { %s1722_s10 = scalar_lea.vmem %s168_s29, 16  ;;  %p1730_p13 = scmp.lt.s32.totalorder %s168_s29, %s168_s29 }
  0x22   : > { %p1723_p1 = scmp.ne.s32.totalorder %s168_s29, %s1722_s10  ;;  %p1731_p0 = scmp.lt.s32.totalorder %s1722_s10, %s1722_s10 }
  0x24   : > { %p1725_p2 = pnand %p1723_p1, %p1698_p12  ;;  %p1732_p4 = por %p1731_p0, %p1730_p13 }
  0x26   : > { %p1726_p6 = pneg %p1725_p2 }
  0x28   : > { %p1733_p8 = pnand %p1732_p4, %p1726_p6 }
  0x2a   : > { %1736 = shalt.err (!%p1733_p8)
}
  0x2b   : > { %s1840_s11 = smov [#allocation10]   ;;  %p28_p1 = scmp.eq.s32.totalorder %s27_s6, 0 }
  0x2c   : > { %1627 = dma.vmem_to_smem (!%p1938_p11), %s168_s29, 16, %s1840_s11, [#allocation7]  }
  0x2d   : > { %s30_s12 = sadd.s32 1, %s1833_s19  ;;  %p37_p2 = scmp.ne.s32.totalorder %s1833_s19, %s1829_s18 }
  0x2e   : > { %p38_p9 = scmp.eq.s32.totalorder %s1837_s20, 0  ;;  %p2545_p6 = scmp.eq.s32.totalorder %s1907_s3, 1 }
  0x2f   : > { %s1967_s13 = scalar_select %p28_p1, %s1833_s19, %s30_s12  }
  0x30   : > { %p39_p4 = por %p38_p9, %p37_p2  ;;  %p1971_p8 = por %p2545_p6, %p37_p2 }
  0x31   : > { %p1638_p12 = scmp.lt.s32.totalorder %s1837_s20, 2  ;;  %s181_s15 = sand.u32 1, %s1833_s19  }
  0x32   : > { %s2546_s14 = scalar_select %p1971_p8, 1, 0 }
  0x33   : > { %s1496_s16 = sshll.u32 %s181_s15, 3  ;;  %s1607_s21 = sshll.u32 %s1837_s20, 7 }
  0x34   : > { %s1981_s27 = scalar_lea.hbm %s2532_s0, %s1607_s21  ;;  %s185_s28 = scalar_lea.vmem [#allocation4], %s1496_s16 }
  0x35   : > { %s193_s29 = sshll.u32 %s185_s28, 4  ;;  %p1983_p11 = pnand %p1638_p12, %p39_p4  ;;  %s194_s29 = int_to_ptr.vmem [resolvable:$true] %s193_s29 }
  0x36   : > { %s182_s6 = scalar_lea.sflag [#allocation5], %s181_s15  ;;  %s1737_s7 = scalar_lea.hbm %s1981_s27, 128 }
  0x37   : > { %p1738_p3 = scmp.ne.s32.totalorder %s1981_s27, %s1737_s7  ;;  %p1739_p5 = pneg %p1983_p11 }
  0x38   : > { %s1742_s10 = scalar_lea.hbm %s2532_s0, 256  ;;  %p1743_p13 = scmp.lt.s32.totalorder %s1981_s27, %s2532_s0 }
  0x39   : > { %p1740_p7 = pnand %p1739_p5, %p1738_p3  ;;  %p1744_p0 = scmp.lt.s32.totalorder %s1742_s10, %s1737_s7 }
  0x3b   : > { %p1741_p10 = pneg %p1740_p7  ;;  %p1745_p1 = por %p1744_p0, %p1743_p13 }
  0x3d   : > { %p1746_p2 = pnand %p1745_p1, %p1741_p10 }
  0x3f   : > { %1749 = shalt.err (!%p1746_p2)
}
  0x40   : > { %s1750_s16 = scalar_lea.vmem %s194_s29, 128  ;;  %s1841_s15 = smov [#allocation4]  }
  0x41   : > { %p1751_p9 = scmp.ne.s32.totalorder %s194_s29, %s1750_s16  ;;  %s1755_s21 = sshll.u32 %s1841_s15, 4  ;;  %s1756_s21 = int_to_ptr.vmem [resolvable:$false] %s1755_s21 }
  0x42   : > { %s1757_s25 = scalar_lea.vmem %s1756_s21, 256  ;;  %p1758_p12 = scmp.lt.s32.totalorder %s194_s29, %s1756_s21 }
  0x43   : > { %p1753_p4 = pnand %p1751_p9, %p1739_p5  ;;  %p1759_p3 = scmp.lt.s32.totalorder %s1757_s25, %s1750_s16 }
  0x45   : > { %p1754_p6 = pneg %p1753_p4  ;;  %p1760_p7 = por %p1759_p3, %p1758_p12 }
  0x47   : > { %p1761_p8 = pnand %p1760_p7, %p1754_p6 }
  0x49   : > { %1764 = shalt.err (!%p1761_p8)
}
  0x4a   : > { %1631 = dma.hbm_to_vmem [thread:$0]  (!%p1983_p11), %s1981_s27, 128, %s194_s29, %s182_s6  }
  0x4b   : > { %p2548_p10 = scmp.ne.s32.totalorder %s2543_s24, 0 }
  0x4c   : > { %s2004_s26 = sand.u32 (!%p2548_p10), 1, %s1829_s18   ;;  %p2549_p8 = scmp.ne.s32.totalorder (!%p2548_p10), %s2541_s22, 0 }
  0x4d   : > { %202 = sbr.rel (%p2548_p10) target bundleno = 681 (0x2a9), region = 36  ;;  %s1500_s28 = sshll.u32 (!%p2548_p10), %s2004_s26, 3 }
  0x4e   : > { %s205_s7 = scalar_lea.sflag (!%p2548_p10), [#allocation5], %s2004_s26  ;;  %s2010_s8 = scalar_lea.vmem (!%p2548_p10), [#allocation4], %s1500_s28 }
  0x52   : > { %1808 = dma.done.wait (%p2549_p8), %s205_s7, 128  }
  0x53   : > { %1810 = vsyncadd (%p2549_p8), %s205_s7, 4294967168  ;;  %p2550_p11 = scmp.eq.s32.totalorder %s1907_s3, 0 }
  0x55   : > { %1812 = dma.done.wait (%p2550_p11), [#allocation9], 256   ;;  %p2551_p5 = pmov %p2550_p11 }
  0x57   : > { %1814 = vsyncadd (%p2551_p5), [#allocation9], 4294967040  ;;  %p2552_p13 = pmov %p2551_p5 }
  0x58   : > { %p2553_p0 = pmov %p2551_p5 }
  0x59   : > { %1816 = dma.done.wait (%p2552_p13), [#allocation7], 16  }
  0x5a   : > { %1818 = vsyncadd (%p2553_p0), [#allocation7], 4294967280 }
  0x5b   : > { %221 = sfence }
  0x5c   : > { %v242_v0 = vld [vmem:[%s2010_s8] sm:$0xff]  ;;  %vm246_vm0 = vcmask 1043456   ;;  %vm277_vm1 = vcmask 409600   ;;  %vm279_vm2 = vcmask 1040792   ;;  %v1842_v8 = vmov 0.0   ;;  %s1844_s22 = smov 51  }
  0x5d   : > { %v244_v1 = vcombine.high %v242_v0, %v242_v0  ;;  %v263_v2 = vsel %vm246_vm0, %v242_v0, -inf  ;;  %v247_v3 = vsel %vm246_vm0, %v242_v0, 0.0  ;;  %281 = vst.msk [vmem:[#allocation2 + $0x1] sm:$0x1] %vm277_vm1, %v1842_v8  ;;  %278 = vst.msk [vmem:[#allocation2] sm:$0x1] %vm277_vm1, %v1842_v8  ;;  %v289_v15 = vlaneseq }
  0x5e   : > { %v264_v4 = vrot.slane %v263_v2, 4  ;;  %v248_v5 = vrot.slane %v247_v3, 4  ;;  %282 = vst.msk [vmem:[#allocation2 + $0x5] sm:$0x1] %vm279_vm2, %v1842_v8  ;;  %280 = vst.msk [vmem:[#allocation2 + $0x4] sm:$0x1] %vm279_vm2, %v1842_v8 }
  0x5f   : > { %v270_v6 = vsel %vm246_vm0, %v244_v1, -inf  ;;  %v254_v7 = vsel %vm246_vm0, %v244_v1, 0.0  ;;  %v1843_v13 = vmov 1966171168   ;;  %v2025_v25 = vshrl.u32 %v289_v15, 7  ;;  %s1567_s24 = sld [smem:[#allocation10 + $0x3a]] }
  0x60   : > { %v265_v9 = vmax.f32 %v263_v2, %v264_v4  ;;  %v271_v10 = vrot.slane %v270_v6, 4  ;;  %v249_v11 = vadd.f32 %v248_v5, %v247_v3  ;;  %v255_v12 = vrot.slane %v254_v7, 4  ;;  %s1560_s27 = sld [smem:[#allocation10 + $0x39]]  ;;  %s1845_s12 = smov 112  }
  0x61   : > { %v287_v14 = vunpack.c.l.s4 %v1843_v13  ;;  %vm2028_vm3 = vcmp.ge.s32.totalorder %v289_v15, 51  ;;  %vm2032_vm4 = vcmp.lt.s32.totalorder %v289_v15, 307  ;;  %vm303_vm5 = vcmask 416768   ;;  %s1568_s29 = sld [smem:[#allocation10 + $0x41]]  ;;  %s1846_s21 = smov 96  }
  0x62   : > { %v266_v16 = vrot.slane %v265_v9, 2  ;;  %v272_v17 = vmax.f32 %v270_v6, %v271_v10  ;;  %v250_v18 = vrot.slane %v249_v11, 2  ;;  %v256_v19 = vadd.f32 %v255_v12, %v254_v7  ;;  %vm309_vm6 = vmand %vm2028_vm3, %vm2032_vm4  ;;  %s1561_s30 = sld [smem:[#allocation10 + $0x40]]  ;;  %p2558_p2 = scmp.ne.s32.totalorder %s2546_s14, 0 }
  0x63   : > { %v288_v24 = vunpack.c.0.s8 %v287_v14  ;;  %s1569_s6 = sld [smem:[#allocation10 + $0x48]]  ;;  %vm348_vm7 = vcmask 916480   ;;  %vm359_vm8 = vcmask 785408   ;;  %vm370_vm9 = vcmask 654336  }
  0x64   : > { %v267_v20 = vmax.f32 %v265_v9, %v266_v16  ;;  %v273_v21 = vrot.slane %v272_v17, 2  ;;  %v251_v22 = vadd.f32 %v250_v18, %v249_v11  ;;  %v257_v23 = vrot.slane %v256_v19, 2  ;;  %s1562_s9 = sld [smem:[#allocation10 + $0x47]] }
  0x65   : > { %v291_v35 = vsub.s32 %v288_v24, %v2025_v25  ;;  %v1006_v53 = vstv %s1567_s24  ;;  %s1581_s10 = sld [smem:[#allocation10 + $0x3c]]  ;;  %vm381_vm10 = vcmask 523264   ;;  %vm392_vm11 = vcmask 392192  }
  0x66   : > { %v268_v26 = vrot.slane %v267_v20, 1  ;;  %v274_v27 = vmax.f32 %v272_v17, %v273_v21  ;;  %v252_v28 = vrot.slane %v251_v22, 1  ;;  %v258_v29 = vadd.f32 %v257_v23, %v256_v19  ;;  %s1574_s11 = sld [smem:[#allocation10 + $0x3b]] }
  0x67   : > { %v934_v54 = vstv %s1560_s27  ;;  %v1016_v58 = vstv %s1568_s29  ;;  %s1570_s16 = sld [smem:[#allocation10 + $0x4f]]  ;;  %vm403_vm12 = vcmask 261120   ;;  %vm480_vm13 = vcmask 1039360  }
  0x68   : > { %v269_v30 = vmax.f32 %v267_v20, %v268_v26  ;;  %v275_v31 = vrot.slane %v274_v27, 1  ;;  %v253_v32 = vadd.f32 %v252_v28, %v251_v22  ;;  %v259_v33 = vrot.slane %v258_v29, 1  ;;  %s1563_s15 = sld [smem:[#allocation10 + $0x4e]] }
  0x69   : > { %v944_v59 = vstv %s1561_s30  ;;  %v1026_v62 = vstv %s1569_s6  ;;  %s1582_s25 = sld [smem:[#allocation10 + $0x43]]  ;;  %s1848_s6 = smov 64   ;;  %vm555_vm14 = vcmask 1031168   ;;  %vm630_vm15 = vcmask 1022976  }
  0x6a   : > { %v276_v34 = vmax.f32 %v274_v27, %v275_v31  ;;  %v260_v36 = vadd.f32 %v259_v33, %v258_v29  ;;  %v261_v37 = vmul.f32 0.25, %v253_v32  ;;  %v954_v63 = vstv %s1562_s9  ;;  %s1575_s7 = sld [smem:[#allocation10 + $0x42]] }
  0x6b   : > { %v1150_v2 = vstv %s1581_s10  ;;  %s1565_s24 = sld [smem:[#allocation10 + $0x5c]]  ;;  %vm705_vm0 = vcmask 1014784   ;;  %vm780_vm1 = vcmask 1006592   ;;  %vm855_vm2 = vcmask 998400  }
  0x6c   : > { %v313_v38 = vcombine.low %v269_v30, %v276_v34  ;;  %v262_v39 = vmul.f32 0.25, %v260_v36  ;;  %v1078_v3 = vstv %s1574_s11  ;;  %s1564_s27 = sld [smem:[#allocation10 + $0x55]] }
  0x6d   : > { %v1036_v6 = vstv %s1570_s16  ;;  %s1577_s29 = sld [smem:[#allocation10 + $0x50]] }
  0x6e   : > { %v320_v40 = vrot.slane %v313_v38, %v291_v35  ;;  %v285_v41 = vcombine.low %v261_v37, %v262_v39  ;;  %v964_v7 = vstv %s1563_s15  ;;  %s1576_s30 = sld [smem:[#allocation10 + $0x49]]  ;;  %s1849_s15 = smov 32  }
  0x6f   : > { %v1160_v10 = vstv %s1582_s25  ;;  %s1589_s9 = sld [smem:[#allocation10 + $0x44]]  ;;  %s1850_s25 = smov 48  }
  0x70   : > { %v327_v42 = vrot.slane %v320_v40, %v291_v35  ;;  %v292_v43 = vrot.slane %v285_v41, %v291_v35  ;;  %v1088_v11 = vstv %s1575_s7  ;;  %s1588_s10 = sld [smem:[#allocation10 + $0x3d]] }
  0x71   : > { %v984_v14 = vstv %s1565_s24  ;;  %s1572_s11 = sld [smem:[#allocation10 + $0x5d]] }
  0x72   : > { %328 = vrot.lane.b32.xlu0 %v327_v42, %s1844_s22  ;;  %v299_v44 = vrot.slane %v292_v43, %v291_v35  ;;  %v974_v15 = vstv %s1564_s27  ;;  %s1571_s16 = sld [smem:[#allocation10 + $0x56]] }
  0x73   : > { %v1108_v18 = vstv %s1577_s29  ;;  %s1584_s7 = sld [smem:[#allocation10 + $0x51]] }
  0x74   : > { %v1098_v19 = vstv %s1576_s30  ;;  %s1583_s24 = sld [smem:[#allocation10 + $0x4a]] }
  0x75   : > { %v1232_v22 = vstv %s1589_s9  ;;  %s1596_s27 = sld [smem:[#allocation10 + $0x45]] }
  0x76   : > { %300 = vrot.lane.b32.xlu0 %v299_v44, %s1844_s22  ;;  %s1847_s22 = smov 80   ;;  %v1222_v23 = vstv %s1588_s10  ;;  %s1595_s29 = sld [smem:[#allocation10 + $0x3e]] }
  0x77   : > { %v1056_v27 = vstv %s1572_s11  ;;  %s1585_s30 = sld [smem:[#allocation10 + $0x58]] }
  0x78   : > { %v1046_v28 = vstv %s1571_s16  ;;  %s1578_s9 = sld [smem:[#allocation10 + $0x57]] }
  0x79   : > { %v1180_v31 = vstv %s1584_s7  ;;  %s1590_s10 = sld [smem:[#allocation10 + $0x4b]] }
  0x7a   : > { %v1170_v32 = vstv %s1583_s24  ;;  %s1511_s11 = sld [smem:[#allocation10 + $0x8]] }
  0x7b   : > { %v1304_v35 = vstv %s1596_s27  ;;  %s1579_s16 = sld [smem:[#allocation10 + $0x5e]] }
  0x7c   : > { %v1294_v36 = vstv %s1595_s29  ;;  %s1512_s7 = sld [smem:[#allocation10 + $0xf]] }
  0x7d   : > { %v1190_v39 = vstv %s1585_s30  ;;  %s1518_s24 = sld [smem:[#allocation10 + $0x9]] }
  0x7e   : > { %v1118_v40 = vstv %s1578_s9  ;;  %s1513_s27 = sld [smem:[#allocation10 + $0x16]] }
  0x7f   : > { %v1242_v44 = vstv %s1590_s10  ;;  %s1519_s29 = sld [smem:[#allocation10 + $0x10]] }
  0x80   : > { %v415_v45 = vstv %s1511_s11  ;;  %s1525_s30 = sld [smem:[#allocation10 + $0xa]] }
  0x81   : > { %s1514_s9 = sld [smem:[#allocation10 + $0x1d]] }
  0x82   : > { %s1520_s10 = sld [smem:[#allocation10 + $0x17]] }
  0x83   : > { %s1526_s11 = sld [smem:[#allocation10 + $0x11]] }
  0xe4   : > { %v329_v47 = vpop.permute.xlu0 %328 }
  0xe5   : > { %v330_v48 = vrot.slane %v329_v47, 7 }
  0xe7   : > { %v331_v49 = vsel %vm303_vm5, %v330_v48, %v329_v47  ;;  %v1128_v48 = vstv %s1579_s16  ;;  %s1532_s16 = sld [smem:[#allocation10 + $0xb]] }
  0xe8   : > { %334 = vst.msk [vmem:[#allocation2 + $0x1] ss:$2 sm:$0x7] %vm309_vm6, %v331_v49  ;;  %v301_v50 = vpop.permute.xlu0 %300  ;;  %v425_v49 = vstv %s1512_s7  ;;  %s1515_s7 = sld [smem:[#allocation10 + $0x24]] }
  0xe9   : > { %v302_v51 = vrot.slane %v301_v50, 7 }
  0xeb   : > { %v304_v52 = vsel %vm303_vm5, %v302_v51, %v301_v50 }
  0xec   : > { %310 = vst.msk [vmem:[#allocation2] ss:$2 sm:$0x7] %vm309_vm6, %v304_v52  ;;  %v490_v52 = vstv %s1518_s24  ;;  %s1521_s24 = sld [smem:[#allocation10 + $0x1e]] }
  0xef   : > { %v2040_v55 = vld [vmem:[#allocation2 + $0x1] ss:$2 sm:$0x7] }
  0xf0   : > { %v1007_v56 = vmul.f32 %v1006_v53, %v2040_v55  ;;  %v935_v57 = vmul.f32 %v934_v54, %v2040_v55  ;;  %v1017_v60 = vmul.f32 %v1016_v58, %v2040_v55  ;;  %v945_v61 = vmul.f32 %v944_v59, %v2040_v55 }
  0xf1   : > { %v1027_v0 = vmul.f32 %v1026_v62, %v2040_v55  ;;  %v955_v1 = vmul.f32 %v954_v63, %v2040_v55  ;;  %v1151_v4 = vmul.f32 %v1150_v2, %v2040_v55  ;;  %v1079_v5 = vmul.f32 %v1078_v3, %v2040_v55 }
  0xf2   : > { %1009 = vrot.lane.b32.xlu1 %v1007_v56, %s1845_s12  ;;  %937 = vrot.lane.b32.xlu0 %v935_v57, %s1845_s12  ;;  %v1037_v8 = vmul.f32 %v1036_v6, %v2040_v55  ;;  %v965_v9 = vmul.f32 %v964_v7, %v2040_v55  ;;  %v1161_v12 = vmul.f32 %v1160_v10, %v2040_v55  ;;  %v435_v53 = vstv %s1513_s27  ;;  %s1527_s27 = sld [smem:[#allocation10 + $0x18]] }
  0xf3   : > { %v1089_v13 = vmul.f32 %v1088_v11, %v2040_v55  ;;  %v985_v16 = vmul.f32 %v984_v14, %v2040_v55  ;;  %v975_v17 = vmul.f32 %v974_v15, %v2040_v55  ;;  %v1109_v20 = vmul.f32 %v1108_v18, %v2040_v55  ;;  %v2092_v43 = vld [vmem:[#allocation2] ss:$2 sm:$0x7] }
  0xf4   : > { %v1099_v21 = vmul.f32 %v1098_v19, %v2040_v55  ;;  %v1233_v24 = vmul.f32 %v1232_v22, %v2040_v55  ;;  %v1223_v26 = vmul.f32 %v1222_v23, %v2040_v55  ;;  %v1057_v29 = vmul.f32 %v1056_v27, %v2040_v55 }
  0xf5   : > { %v1047_v30 = vmul.f32 %v1046_v28, %v2040_v55  ;;  %v1181_v33 = vmul.f32 %v1180_v31, %v2040_v55  ;;  %v1171_v34 = vmul.f32 %v1170_v32, %v2040_v55  ;;  %v1305_v37 = vmul.f32 %v1304_v35, %v2040_v55 }
  0xf6   : > { %1019 = vrot.lane.b32.xlu1 %v1017_v60, %s1846_s21  ;;  %947 = vrot.lane.b32.xlu0 %v945_v61, %s1846_s21  ;;  %v1295_v38 = vmul.f32 %v1294_v36, %v2040_v55  ;;  %v1191_v41 = vmul.f32 %v1190_v39, %v2040_v55  ;;  %v1119_v42 = vmul.f32 %v1118_v40, %v2040_v55  ;;  %v500_v57 = vstv %s1519_s29  ;;  %s1533_s29 = sld [smem:[#allocation10 + $0x12]] }
  0xf7   : > { %v1243_v46 = vmul.f32 %v1242_v44, %v2040_v55  ;;  %v416_v47 = vmul.f32 %v415_v45, %v2092_v43  ;;  %v1129_v50 = vmul.f32 %v1128_v48, %v2040_v55  ;;  %v426_v51 = vmul.f32 %v425_v49, %v2092_v43 }
  0xf8   : > { %v491_v54 = vmul.f32 %v490_v52, %v2092_v43  ;;  %v436_v56 = vmul.f32 %v435_v53, %v2092_v43  ;;  %v565_v58 = vstv %s1525_s30  ;;  %v501_v59 = vmul.f32 %v500_v57, %v2092_v43  ;;  %s1539_s30 = sld [smem:[#allocation10 + $0xc]] }
  0xf9   : > { %v566_v60 = vmul.f32 %v565_v58, %v2092_v43  ;;  %v445_v61 = vstv %s1514_s9  ;;  %v510_v62 = vstv %s1520_s10  ;;  %v640_v2 = vstv %s1532_s16  ;;  %s1516_s9 = sld [smem:[#allocation10 + $0x2b]] }
  0xfa   : > { %1029 = vrot.lane.b32.xlu1 %v1027_v0, %s1847_s22  ;;  %957 = vrot.lane.b32.xlu0 %v955_v1, %s1847_s22  ;;  %v446_v63 = vmul.f32 %v445_v61, %v2092_v43  ;;  %v511_v0 = vmul.f32 %v510_v62, %v2092_v43  ;;  %v575_v1 = vstv %s1526_s11  ;;  %v520_v6 = vstv %s1521_s24  ;;  %s1522_s10 = sld [smem:[#allocation10 + $0x25]] }
  0xfb   : > { %v576_v3 = vmul.f32 %v575_v1, %v2092_v43  ;;  %s1528_s11 = sld [smem:[#allocation10 + $0x1f]] }
  0xfc   : > { %v650_v10 = vstv %s1533_s29  ;;  %s1534_s16 = sld [smem:[#allocation10 + $0x19]] }
  0xfd   : > { %s1546_s24 = sld [smem:[#allocation10 + $0xd]] }
  0xfe   : > { %1153 = vrot.lane.b32.xlu1 %v1151_v4, %s1845_s12  ;;  %1081 = vrot.lane.b32.xlu0 %v1079_v5, %s1845_s12  ;;  %v641_v4 = vmul.f32 %v640_v2, %v2092_v43  ;;  %v455_v5 = vstv %s1515_s7  ;;  %s1540_s7 = sld [smem:[#allocation10 + $0x13]] }
  0xff   : > { %v456_v7 = vmul.f32 %v455_v5, %v2092_v43  ;;  %v465_v14 = vstv %s1516_s9  ;;  %s1529_s29 = sld [smem:[#allocation10 + $0x26]] }
 0x100   : > { %s1541_s9 = sld [smem:[#allocation10 + $0x1a]] }
 0x101   : > { %v595_v18 = vstv %s1528_s11  ;;  %s1530_s11 = sld [smem:[#allocation10 + $0x2d]] }
 0x102   : > { %1039 = vrot.lane.b32.xlu1 %v1037_v8, %s1848_s6  ;;  %967 = vrot.lane.b32.xlu0 %v965_v9, %s1848_s6  ;;  %v521_v8 = vmul.f32 %v520_v6, %v2092_v43  ;;  %v585_v9 = vstv %s1527_s27  ;;  %s1523_s27 = sld [smem:[#allocation10 + $0x2c]] }
 0x103   : > { %v586_v11 = vmul.f32 %v585_v9, %v2092_v43 }
 0x104   : > { %v725_v22 = vstv %s1540_s7  ;;  %s1542_s7 = sld [smem:[#allocation10 + $0x21]] }
 0x106   : > { %1163 = vrot.lane.b32.xlu1 %v1161_v12, %s1846_s21  ;;  %1091 = vrot.lane.b32.xlu0 %v1089_v13, %s1846_s21  ;;  %v651_v12 = vmul.f32 %v650_v10, %v2092_v43  ;;  %v715_v13 = vstv %s1539_s30  ;;  %s1535_s30 = sld [smem:[#allocation10 + $0x20]] }
 0x107   : > { %v716_v15 = vmul.f32 %v715_v13, %v2092_v43 }
 0x108   : > { %v540_v27 = vstv %s1523_s27  ;;  %s1543_s27 = sld [smem:[#allocation10 + $0x28]] }
 0x10a   : > { %987 = vrot.lane.b32.xlu1 %v985_v16, %s1849_s15  ;;  %977 = vrot.lane.b32.xlu0 %v975_v17, %s1850_s25  ;;  %v466_v16 = vmul.f32 %v465_v14, %v2092_v43  ;;  %v530_v17 = vstv %s1522_s10  ;;  %s1547_s10 = sld [smem:[#allocation10 + $0x14]] }
 0x10b   : > { %v531_v19 = vmul.f32 %v530_v17, %v2092_v43 }
 0x10c   : > { %v670_v31 = vstv %s1535_s30  ;;  %s1559_s30 = sld [smem:[#allocation10 + $0x32]] }
 0x10e   : > { %1111 = vrot.lane.b32.xlu1 %v1109_v20, %s1848_s6  ;;  %1101 = vrot.lane.b32.xlu0 %v1099_v21, %s1847_s22  ;;  %v596_v20 = vmul.f32 %v595_v18, %v2092_v43  ;;  %v660_v21 = vstv %s1534_s16  ;;  %s1536_s16 = sld [smem:[#allocation10 + $0x27]] }
 0x10f   : > { %v661_v23 = vmul.f32 %v660_v21, %v2092_v43 }
 0x110   : > { %v800_v35 = vstv %s1547_s10  ;;  %s2156_s10 = sld [smem:[#allocation10 + $0x22]] }
 0x112   : > { %1235 = vrot.lane.b32.xlu1 %v1233_v24, %s1846_s21  ;;  %1225 = vrot.lane.b32.xlu0 %v1223_v26, %s1845_s12  ;;  %v726_v24 = vmul.f32 %v725_v22, %v2092_v43  ;;  %v790_v26 = vstv %s1546_s24  ;;  %s1548_s24 = sld [smem:[#allocation10 + $0x1b]]  ;;  %v930_v49 = vstv %s1559_s30 }
 0x113   : > { %v791_v28 = vmul.f32 %v790_v26, %v2092_v43  ;;  %v931_v58 = vmul.f32 %v930_v49, %v2040_v55  ;;  %s2190_s30 = sld [smem:[#allocation10 + $0x53]] }
 0x114   : > { %v680_v39 = vstv %s1536_s16  ;;  %s2164_s16 = sld [smem:[#allocation10 + $0x29]] }
 0x116   : > { %1059 = vrot.lane.b32.xlu1 %v1057_v29, %s1849_s15  ;;  %1049 = vrot.lane.b32.xlu0 %v1047_v30, %s1850_s25  ;;  %v541_v29 = vmul.f32 %v540_v27, %v2092_v43  ;;  %v605_v30 = vstv %s1529_s29  ;;  %s1537_s29 = sld [smem:[#allocation10 + $0x2e]]  ;;  %v820_v57 = vstv %s2156_s10 }
 0x117   : > { %v606_v32 = vmul.f32 %v605_v30, %v2092_v43  ;;  %s2203_s10 = sld [smem:[#allocation10 + $0x5a]] }
 0x118   : > { %v810_v44 = vstv %s1548_s24  ;;  %s2176_s24 = sld [smem:[#allocation10 + $0x30]] }
 0x11a   : > { %1183 = vrot.lane.b32.xlu1 %v1181_v33, %s1848_s6  ;;  %1173 = vrot.lane.b32.xlu0 %v1171_v34, %s1847_s22  ;;  %v671_v33 = vmul.f32 %v670_v31, %v2092_v43  ;;  %v735_v34 = vstv %s1541_s9  ;;  %s2154_s9 = sld [smem:[#allocation10 + $0x2f]] }
 0x11b   : > { %v736_v36 = vmul.f32 %v735_v34, %v2092_v43 }
 0x11c   : > { %v690_v48 = vstv %s1537_s29  ;;  %s2184_s29 = sld [smem:[#allocation10 + $0x34]] }
 0x11d   : > { %v691_v53 = vmul.f32 %v690_v48, %v2092_v43 }
 0x11e   : > { %1307 = vrot.lane.b32.xlu1 %v1305_v37, %s1846_s21  ;;  %1297 = vrot.lane.b32.xlu0 %v1295_v38, %s1845_s12  ;;  %v801_v37 = vmul.f32 %v800_v35, %v2092_v43  ;;  %v615_v38 = vstv %s1530_s11  ;;  %s2162_s11 = sld [smem:[#allocation10 + $0x52]] }
 0x11f   : > { %v616_v40 = vmul.f32 %v615_v38, %v2092_v43 }
 0x122   : > { %1193 = vrot.lane.b32.xlu1 %v1191_v41, %s1850_s25  ;;  %1121 = vrot.lane.b32.xlu0 %v1119_v42, %s1850_s25  ;;  %v681_v41 = vmul.f32 %v680_v39, %v2092_v43  ;;  %v745_v42 = vstv %s1542_s7  ;;  %s2172_s7 = sld [smem:[#allocation10 + $0x5f]] }
 0x123   : > { %v746_v45 = vmul.f32 %v745_v42, %v2092_v43 }
 0x124   : > { %v1252_v2 = vstv %s2162_s11  ;;  %s2207_s11 = sld [smem:[#allocation10 + $0x59]] }
 0x126   : > { %1245 = vrot.lane.b32.xlu0 %v1243_v46, %s1847_s22  ;;  %418 = vrot.lane.b32.xlu1 %v416_v47, %s1845_s12  ;;  %v811_v46 = vmul.f32 %v810_v44, %v2092_v43  ;;  %v755_v47 = vstv %s1543_s27  ;;  %s2181_s27 = sld [smem:[#allocation10 + $0x35]] }
 0x127   : > { %v756_v52 = vmul.f32 %v755_v47, %v2092_v43 }
 0x12a   : > { %1131 = vrot.lane.b32.xlu0 %v1129_v50, %s1849_s15  ;;  %428 = vrot.lane.b32.xlu1 %v426_v51, %s1846_s21  ;;  %v1262_v38 = vstv %s2207_s11  ;;  %s2271_s11 = sld [smem:[#allocation10 + $0x2a]] }
 0x12c   : > { %v1146_v14 = vstv %s2181_s27  ;;  %s2236_s27 = sld [smem:[#allocation10 + $0x15]] }
 0x12d   : > { %v1147_v26 = vmul.f32 %v1146_v14, %v2040_v55 }
 0x12e   : > { %493 = vrot.lane.b32.xlu0 %v491_v54, %s1845_s12  ;;  %438 = vrot.lane.b32.xlu1 %v436_v56, %s1847_s22  ;;  %v765_v56 = vstv %s2154_s9  ;;  %s2194_s9 = sld [smem:[#allocation10 + $0x4c]] }
 0x132   : > { %503 = vrot.lane.b32.xlu0 %v501_v59, %s1846_s21  ;;  %568 = vrot.lane.b32.xlu1 %v566_v60, %s1845_s12 }
 0x136   : > { %448 = vrot.lane.b32.xlu0 %v446_v63, %s1848_s6  ;;  %513 = vrot.lane.b32.xlu1 %v511_v0, %s1847_s22  ;;  %v766_v63 = vmul.f32 %v765_v56, %v2092_v43  ;;  %v821_v0 = vmul.f32 %v820_v57, %v2092_v43 }
 0x13a   : > { %578 = vrot.lane.b32.xlu0 %v576_v3, %s1846_s21  ;;  %643 = vrot.lane.b32.xlu1 %v641_v4, %s1845_s12  ;;  %v830_v3 = vstv %s2164_s16  ;;  %s2216_s16 = sld [smem:[#allocation10 + $0x60]] }
 0x13b   : > { %v831_v9 = vmul.f32 %v830_v3, %v2092_v43 }
 0x13e   : > { %458 = vrot.lane.b32.xlu0 %v456_v7, %s1850_s25  ;;  %523 = vrot.lane.b32.xlu1 %v521_v8, %s1848_s6  ;;  %v1253_v8 = vmul.f32 %v1252_v2, %v2040_v55 }
 0x140   : > { %v1272_v48 = vstv %s2216_s16  ;;  %s1553_s16 = sld [smem:[#allocation10 + $0x38]] }
 0x142   : > { %588 = vrot.lane.b32.xlu0 %v586_v11, %s1847_s22  ;;  %653 = vrot.lane.b32.xlu1 %v651_v12, %s1846_s21  ;;  %v1200_v11 = vstv %s2172_s7  ;;  %v840_v12 = vstv %s2176_s24  ;;  %s2220_s7 = sld [smem:[#allocation10 + $0x7]] }
 0x143   : > { %s2232_s24 = sld [smem:[#allocation10 + $0x61]] }
 0x146   : > { %718 = vrot.lane.b32.xlu0 %v716_v15, %s1845_s12  ;;  %468 = vrot.lane.b32.xlu1 %v466_v16, %s1849_s15  ;;  %v1074_v15 = vstv %s2184_s29  ;;  %s2243_s29 = sld [smem:[#allocation10 + $0xe]] }
 0x147   : > { %v1075_v27 = vmul.f32 %v1074_v15, %v2040_v55 }
 0x148   : > { %v342_v49 = vstv %s2220_s7  ;;  %s1594_s7 = sld [smem:[#allocation10 + $0x37]] }
 0x14a   : > { %533 = vrot.lane.b32.xlu0 %v531_v19, %s1850_s25  ;;  %598 = vrot.lane.b32.xlu1 %v596_v20, %s1848_s6  ;;  %v1201_v19 = vmul.f32 %v1200_v11, %v2040_v55  ;;  %v841_v20 = vmul.f32 %v840_v12, %v2092_v43 }
 0x14e   : > { %663 = vrot.lane.b32.xlu0 %v661_v23, %s1847_s22  ;;  %728 = vrot.lane.b32.xlu1 %v726_v24, %s1846_s21  ;;  %v1324_v23 = vstv %s2190_s30  ;;  %v1314_v24 = vstv %s2194_s9  ;;  %s2247_s30 = sld [smem:[#allocation10 + $0x23]] }
 0x14f   : > { %v1325_v34 = vmul.f32 %v1324_v23, %v2040_v55  ;;  %v1315_v35 = vmul.f32 %v1314_v24, %v2040_v55  ;;  %s2253_s9 = sld [smem:[#allocation10 + $0x36]] }
 0x152   : > { %793 = vrot.lane.b32.xlu0 %v791_v28, %s1845_s12  ;;  %543 = vrot.lane.b32.xlu1 %v541_v29, %s1849_s15 }
 0x154   : > { %v386_v12 = vstv %s2247_s30  ;;  %s2305_s30 = sld [smem:[#allocation10 + $0x4d]] }
 0x155   : > { %v1218_v15 = vstv %s2253_s9  ;;  %s2314_s9 = sld [smem:[#allocation10 + $0x54]] }
 0x156   : > { %608 = vrot.lane.b32.xlu0 %v606_v32, %s1850_s25  ;;  %673 = vrot.lane.b32.xlu1 %v671_v33, %s1848_s6 }
 0x15a   : > { %738 = vrot.lane.b32.xlu0 %v736_v36, %s1847_s22  ;;  %803 = vrot.lane.b32.xlu1 %v801_v37, %s1846_s21  ;;  %v1334_v37 = vstv %s2203_s10  ;;  %s2261_s10 = sld [smem:[#allocation10 + $0x1c]] }
 0x15b   : > { %v1335_v44 = vmul.f32 %v1334_v37, %v2040_v55 }
 0x15e   : > { %618 = vrot.lane.b32.xlu0 %v616_v40, %s1849_s15  ;;  %683 = vrot.lane.b32.xlu1 %v681_v41, %s1850_s25 }
 0x160   : > { %v375_v24 = vstv %s2261_s10  ;;  %s1531_s10 = sld [smem:[#allocation10 + $0x4]] }
 0x162   : > { %748 = vrot.lane.b32.xlu0 %v746_v45, %s1848_s6  ;;  %813 = vrot.lane.b32.xlu1 %v811_v46, %s1847_s22  ;;  %v1263_v45 = vmul.f32 %v1262_v38, %v2040_v55 }
 0x164   : > { %v2168_v50 = vpop.permute.xlu1 %1009  ;;  %v938_v51 = vpop.permute.xlu0 %937 }
 0x165   : > { %v939_v54 = vrot.slane %v938_v51, 1 }
 0x166   : > { %758 = vrot.lane.b32.xlu0 %v756_v52, %s1850_s25  ;;  %693 = vrot.lane.b32.xlu1 %v691_v53, %s1849_s15 }
 0x167   : > { %v940_v59 = vsel %vm348_vm7, %v938_v51, %v939_v54 }
 0x168   : > { %v942_v60 = vadd.f32 %v940_v59, %v931_v58  ;;  %v2186_v61 = vpop.permute.xlu1 %1019  ;;  %v948_v62 = vpop.permute.xlu0 %947  ;;  %v1273_v58 = vmul.f32 %v1272_v48, %v2040_v55  ;;  %v343_v59 = vmul.f32 %v342_v49, %v2092_v43 }
 0x169   : > { %v949_v1 = vrot.slane %v948_v62, 1 }
 0x16a   : > { %768 = vrot.lane.b32.xlu0 %v766_v63, %s1849_s15  ;;  %823 = vrot.lane.b32.xlu1 %v821_v0, %s1848_s6  ;;  %v1344_v63 = vstv %s2232_s24  ;;  %v364_v0 = vstv %s2236_s27  ;;  %s1554_s24 = sld [smem:[#allocation10 + $0x3f]] }
 0x16b   : > { %v950_v4 = vsel %vm359_vm8, %v948_v62, %v949_v1  ;;  %s2296_s27 = sld [smem:[#allocation10 + $0x46]] }
 0x16c   : > { %v952_v5 = vadd.f32 %v950_v4, %v942_v60  ;;  %v2199_v6 = vpop.permute.xlu1 %1029  ;;  %v958_v7 = vpop.permute.xlu0 %957 }
 0x16d   : > { %v959_v10 = vrot.slane %v958_v7, 1 }
 0x16e   : > { %1255 = vrot.lane.b32.xlu0 %v1253_v8, %s1848_s6  ;;  %833 = vrot.lane.b32.xlu1 %v831_v9, %s1850_s25  ;;  %v353_v8 = vstv %s2243_s29  ;;  %s2299_s29 = sld [smem:[#allocation10 + $0x33]] }
 0x16f   : > { %v960_v13 = vsel %vm370_vm9, %v958_v7, %v959_v10  ;;  %v365_v7 = vmul.f32 %v364_v0, %v2092_v43 }
 0x170   : > { %v962_v16 = vadd.f32 %v960_v13, %v952_v5  ;;  %v1154_v17 = vpop.permute.xlu1 %1153  ;;  %v1082_v18 = vpop.permute.xlu0 %1081  ;;  %v1345_v5 = vmul.f32 %v1344_v63, %v2040_v55 }
 0x171   : > { %v1155_v21 = vrot.slane %v1154_v17, 1  ;;  %v1083_v22 = vrot.slane %v1082_v18, 1  ;;  %v888_v0 = vstv %s2296_s27  ;;  %s1855_s27 = smov 123  }
 0x172   : > { %1203 = vrot.lane.b32.xlu0 %v1201_v19, %s1849_s15  ;;  %843 = vrot.lane.b32.xlu1 %v841_v20, %s1849_s15  ;;  %v354_v19 = vmul.f32 %v353_v8, %v2092_v43  ;;  %v387_v20 = vmul.f32 %v386_v12, %v2092_v43  ;;  %v1021_v8 = vrot.slane %v2186_v61, 1 }
 0x173   : > { %v1156_v28 = vsel %vm348_vm7, %v1154_v17, %v1155_v21  ;;  %v1084_v29 = vsel %vm348_vm7, %v1082_v18, %v1083_v22 }
 0x174   : > { %v1158_v30 = vadd.f32 %v1156_v28, %v1147_v26  ;;  %v1086_v31 = vadd.f32 %v1084_v29, %v1075_v27  ;;  %v2228_v32 = vpop.permute.xlu1 %1039  ;;  %v968_v33 = vpop.permute.xlu0 %967  ;;  %v1219_v26 = vmul.f32 %v1218_v15, %v2040_v55 }
 0x175   : > { %v969_v36 = vrot.slane %v968_v33, 1 }
 0x176   : > { %1327 = vrot.lane.b32.xlu0 %v1325_v34, %s1848_s6  ;;  %1317 = vrot.lane.b32.xlu1 %v1315_v35, %s1847_s22  ;;  %v397_v35 = vstv %s2271_s11  ;;  %s2396_s11 = sld [smem:[#allocation10 + $0x5]] }
 0x177   : > { %v970_v39 = vsel %vm381_vm10, %v968_v33, %v969_v36  ;;  %v376_v33 = vmul.f32 %v375_v24, %v2092_v43 }
 0x178   : > { %v972_v40 = vadd.f32 %v970_v39, %v962_v16  ;;  %v1164_v41 = vpop.permute.xlu1 %1163  ;;  %v1092_v42 = vpop.permute.xlu0 %1091  ;;  %v398_v39 = vmul.f32 %v397_v35, %v2092_v43 }
 0x179   : > { %v1165_v46 = vrot.slane %v1164_v41, 1  ;;  %v1093_v47 = vrot.slane %v1092_v42, 1 }
 0x17a   : > { %1337 = vrot.lane.b32.xlu0 %v1335_v44, %s1850_s25  ;;  %1265 = vrot.lane.b32.xlu1 %v1263_v45, %s1850_s25  ;;  %v1290_v45 = vstv %s1594_s7  ;;  %s1853_s7 = smov 125  }
 0x17b   : > { %v1166_v51 = vsel %vm359_vm8, %v1164_v41, %v1165_v46  ;;  %v1094_v52 = vsel %vm359_vm8, %v1092_v42, %v1093_v47  ;;  %v868_v42 = vstv %s1553_s16  ;;  %s2413_s16 = sld [smem:[#allocation10 + $0x6]] }
 0x17c   : > { %v2255_v53 = vadd.f32 %v1166_v51, %v1158_v30  ;;  %v1096_v54 = vadd.f32 %v1094_v52, %v1086_v31  ;;  %v988_v56 = vpop.permute.xlu1 %987  ;;  %v978_v57 = vpop.permute.xlu0 %977  ;;  %v869_v49 = vmul.f32 %v868_v42, %v2040_v55 }
 0x17d   : > { %v989_v60 = vrot.slane %v988_v56, 1  ;;  %v979_v62 = vrot.slane %v978_v57, 1 }
 0x17e   : > { %1275 = vrot.lane.b32.xlu1 %v1273_v58, %s1849_s15  ;;  %345 = vrot.lane.b32.xlu0 %v343_v59, %s1845_s12 }
 0x17f   : > { %v980_v1 = vsel %vm392_vm11, %v978_v57, %v979_v62  ;;  %v990_v9 = vsel %vm403_vm12, %v988_v56, %v989_v60  ;;  %v878_v56 = vstv %s1554_s24  ;;  %v1291_v57 = vmul.f32 %v1290_v45, %v2040_v55  ;;  %s1854_s24 = smov 124  }
 0x180   : > { %v982_v2 = vadd.f32 %v980_v1, %v972_v40  ;;  %v1112_v3 = vpop.permute.xlu1 %1111  ;;  %v1102_v4 = vpop.permute.xlu0 %1101  ;;  %v879_v63 = vmul.f32 %v878_v56, %v2040_v55  ;;  %v1011_v1 = vrot.slane %v2168_v50, 1 }
 0x181   : > { %v1113_v10 = vrot.slane %v1112_v3, 1  ;;  %v1103_v11 = vrot.slane %v1102_v4, 1 }
 0x182   : > { %1347 = vrot.lane.b32.xlu1 %v1345_v5, %s1849_s15  ;;  %367 = vrot.lane.b32.xlu0 %v365_v7, %s1847_s22  ;;  %v2275_v13 = vadd.f32 %v990_v9, %v982_v2  ;;  %v1002_v7 = vstv %s2299_s29  ;;  %s1856_s29 = smov 122  }
 0x183   : > { %v1104_v14 = vsel %vm370_vm9, %v1102_v4, %v1103_v11  ;;  %v1114_v21 = vsel %vm381_vm10, %v1112_v3, %v1113_v10 }
 0x184   : > { %v1106_v16 = vadd.f32 %v1104_v14, %v1096_v54  ;;  %v1236_v17 = vpop.permute.xlu1 %1235  ;;  %v1226_v18 = vpop.permute.xlu0 %1225 }
 0x185   : > { %v1237_v22 = vrot.slane %v1236_v17, 1  ;;  %v1227_v23 = vrot.slane %v1226_v18, 1 }
 0x186   : > { %356 = vrot.lane.b32.xlu1 %v354_v19, %s1846_s21  ;;  %389 = vrot.lane.b32.xlu0 %v387_v20, %s1850_s25  ;;  %v1116_v27 = vadd.f32 %v1114_v21, %v1106_v16  ;;  %v889_v16 = vmul.f32 %v888_v0, %v2040_v55  ;;  %v898_v20 = vstv %s2305_s30  ;;  %v1003_v21 = vmul.f32 %v1002_v7, %v2040_v55  ;;  %s335_s30 = sld [smem:[#allocation10]] }
 0x187   : > { %v1228_v28 = vsel %vm348_vm7, %v1226_v18, %v1227_v23  ;;  %v1238_v34 = vsel %vm359_vm8, %v1236_v17, %v1237_v22  ;;  %v1012_v17 = vsel %vm348_vm7, %v2168_v50, %v1011_v1  ;;  %v1031_v18 = vrot.slane %v2199_v6, 1 }
 0x188   : > { %v1230_v29 = vadd.f32 %v1228_v28, %v1219_v26  ;;  %v2287_v30 = vpop.permute.xlu1 %1059  ;;  %v2289_v31 = vpop.permute.xlu0 %1049  ;;  %v1022_v22 = vsel %vm359_vm8, %v2186_v61, %v1021_v8  ;;  %v1041_v23 = vrot.slane %v2228_v32, 1  ;;  %v1014_v26 = vadd.f32 %v1012_v17, %v1003_v21 }
 0x18a   : > { %378 = vrot.lane.b32.xlu1 %v376_v33, %s1848_s6  ;;  %v1240_v36 = vadd.f32 %v1238_v34, %v1230_v29  ;;  %v899_v29 = vmul.f32 %v898_v20, %v2040_v55  ;;  %v1032_v33 = vsel %vm370_vm9, %v2199_v6, %v1031_v18  ;;  %v1051_v34 = vrot.slane %v2289_v31, 1 }
 0x18b   : > { %v1024_v61 = vadd.f32 %v1022_v22, %v1014_v26 }
 0x18c   : > { %v1184_v37 = vpop.permute.xlu1 %1183  ;;  %v1174_v38 = vpop.permute.xlu0 %1173  ;;  %v1052_v6 = vsel %vm392_vm11, %v2289_v31, %v1051_v34 }
 0x18d   : > { %v1185_v40 = vrot.slane %v1184_v37, 1  ;;  %v1175_v41 = vrot.slane %v1174_v38, 1 }
 0x18e   : > { %400 = vrot.lane.b32.xlu1 %v398_v39, %s1849_s15  ;;  %v1034_v39 = vadd.f32 %v1032_v33, %v1024_v61 }
 0x18f   : > { %v1176_v44 = vsel %vm370_vm9, %v1174_v38, %v1175_v41  ;;  %v1186_v51 = vsel %vm381_vm10, %v1184_v37, %v1185_v40  ;;  %v908_v37 = vstv %s2314_s9  ;;  %v1042_v38 = vsel %vm381_vm10, %v2228_v32, %v1041_v23  ;;  %s1552_s9 = sld [smem:[#allocation10 + $0x31]] }
 0x190   : > { %v1178_v46 = vadd.f32 %v1176_v44, %v2255_v53  ;;  %v1308_v47 = vpop.permute.xlu1 %1307  ;;  %v1298_v48 = vpop.permute.xlu0 %1297  ;;  %v909_v44 = vmul.f32 %v908_v37, %v2040_v55 }
 0x191   : > { %v1309_v52 = vrot.slane %v1308_v47, 1  ;;  %v1299_v54 = vrot.slane %v1298_v48, 1 }
 0x192   : > { %871 = vrot.lane.b32.xlu1 %v869_v49, %s1845_s12  ;;  %v1188_v58 = vadd.f32 %v1186_v51, %v1178_v46  ;;  %s2330_s12 = sld [smem:[#allocation10 + $0x5b]]  ;;  %v1044_v46 = vadd.f32 %v1042_v38, %v1034_v39 }
 0x193   : > { %v1300_v53 = vsel %vm348_vm7, %v1298_v48, %v1299_v54  ;;  %v1310_v2 = vsel %vm359_vm8, %v1308_v47, %v1309_v52  ;;  %v1061_v47 = vrot.slane %v2287_v30, 1 }
 0x194   : > { %v1302_v59 = vadd.f32 %v1300_v53, %v1291_v57  ;;  %v1194_v60 = vpop.permute.xlu1 %1193  ;;  %v1122_v62 = vpop.permute.xlu0 %1121  ;;  %v1054_v48 = vadd.f32 %v1052_v6, %v1044_v46 }
 0x195   : > { %v1195_v3 = vrot.slane %v1194_v60, 1  ;;  %v1123_v4 = vrot.slane %v1122_v62, 1  ;;  %v1062_v52 = vsel %vm403_vm12, %v2287_v30, %v1061_v47 }
 0x196   : > { %881 = vrot.lane.b32.xlu1 %v879_v63, %s1846_s21  ;;  %v2317_v5 = vadd.f32 %v1310_v2, %v1302_v59  ;;  %s1510_s21 = sld [smem:[#allocation10 + $0x1]]  ;;  %v1064_v56 = vadd.f32 %v1062_v52, %v1054_v48 }
 0x197   : > { %v1196_v9 = vsel %vm392_vm11, %v1194_v60, %v1195_v3  ;;  %v1124_v10 = vsel %vm392_vm11, %v1122_v62, %v1123_v4 }
 0x198   : > { %v2323_v11 = vadd.f32 %v1196_v9, %v1188_v58  ;;  %v1126_v12 = vadd.f32 %v1124_v10, %v1116_v27  ;;  %v419_v14 = vpop.permute.xlu1 %418  ;;  %v1246_v15 = vpop.permute.xlu0 %1245  ;;  %v918_v45 = vstv %s2330_s12  ;;  %s1361_s12 = sld [smem:[#allocation3]] }
 0x199   : > { %v1247_v19 = vrot.slane %v1246_v15, 1  ;;  %v919_v51 = vmul.f32 %v918_v45, %v2040_v55  ;;  %v420_v57 = vrot.slane %v419_v14, 1 }
 0x19a   : > { %891 = vrot.lane.b32.xlu1 %v889_v16, %s1847_s22  ;;  %s1851_s22 = smov 126  }
 0x19b   : > { %v1248_v24 = vsel %vm370_vm9, %v1246_v15, %v1247_v19  ;;  %v421_v55 = vsel %vm348_vm7, %v419_v14, %v420_v57 }
 0x19c   : > { %v2338_v50 = vadd.f32 %v1248_v24, %v1240_v36  ;;  %v429_v27 = vpop.permute.xlu1 %428  ;;  %v1132_v28 = vpop.permute.xlu0 %1131  ;;  %v411_v59 = vstv %s1510_s21  ;;  %s1608_s21 = sshll.u32 %s1907_s3, 7 }
 0x19d   : > { %v1133_v35 = vrot.slane %v1132_v28, 1  ;;  %v430_v60 = vrot.slane %v429_v27, 1  ;;  %v412_v63 = vmul.f32 %v411_v59, %v2092_v43 }
 0x19e   : > { %901 = vrot.lane.b32.xlu1 %v899_v29, %s1848_s6  ;;  %s1517_s6 = sld [smem:[#allocation10 + $0x2]] }
 0x19f   : > { %v1134_v36 = vsel %vm403_vm12, %v1132_v28, %v1133_v35  ;;  %v431_v1 = vsel %vm359_vm8, %v429_v27, %v430_v60  ;;  %v423_v3 = vadd.f32 %v421_v55, %v412_v63 }
 0x1a0   : > { %v2349_v40 = vadd.f32 %v1134_v36, %v1126_v12  ;;  %v439_v41 = vpop.permute.xlu1 %438  ;;  %v494_v42 = vpop.permute.xlu0 %493 }
 0x1a1   : > { %v440_v62 = vrot.slane %v439_v41, 1  ;;  %v433_v8 = vadd.f32 %v431_v1, %v423_v3  ;;  %v495_v15 = vrot.slane %v494_v42, 1 }
 0x1a2   : > { %911 = vrot.lane.b32.xlu1 %v909_v44, %s1850_s25  ;;  %s1852_s25 = smov 127  }
 0x1a3   : > { %v441_v4 = vsel %vm370_vm9, %v439_v41, %v440_v62  ;;  %v496_v24 = vsel %vm348_vm7, %v494_v42, %v495_v15 }
 0x1a4   : > { %v2357_v32 = vpop.permute.xlu1 %568  ;;  %v504_v49 = vpop.permute.xlu0 %503  ;;  %v443_v14 = vadd.f32 %v441_v4, %v433_v8  ;;  %v486_v20 = vstv %s1517_s6 }
 0x1a5   : > { %v505_v21 = vrot.slane %v504_v49, 1  ;;  %v487_v28 = vmul.f32 %v486_v20, %v2092_v43  ;;  %v570_v45 = vrot.slane %v2357_v32, 1 }
 0x1a6   : > { %921 = vrot.lane.b32.xlu1 %v919_v51, %s1849_s15  ;;  %s1524_s15 = sld [smem:[#allocation10 + $0x3]] }
 0x1a7   : > { %v506_v35 = vsel %vm359_vm8, %v504_v49, %v505_v21  ;;  %v498_v61 = vadd.f32 %v496_v24, %v487_v28  ;;  %v711_v21 = vstv %s2396_s11  ;;  %s1385_s11 = scalar_lea.sflag [#allocation6], %s2004_s26 }
 0x1a8   : > { %v514_v54 = vpop.permute.xlu1 %513  ;;  %v449_v31 = vpop.permute.xlu0 %448 }
 0x1a9   : > { %v450_v2 = vrot.slane %v449_v31, 1  ;;  %v515_v26 = vrot.slane %v514_v54, 1  ;;  %v508_v39 = vadd.f32 %v506_v35, %v498_v61 }
 0x1aa   : > { %1066 = vrot.lane.b32.xlu1 %v1064_v56, %s1851_s22  ;;  %v571_v56 = vsel %vm348_vm7, %v2357_v32, %v570_v45 }
 0x1ab   : > { %v451_v12 = vsel %vm381_vm10, %v449_v31, %v450_v2  ;;  %v516_v38 = vsel %vm370_vm9, %v514_v54, %v515_v26 }
 0x1ac   : > { %v2364_v58 = vpop.permute.xlu1 %643  ;;  %v2366_v53 = vpop.permute.xlu0 %578  ;;  %v453_v17 = vadd.f32 %v451_v12, %v443_v14  ;;  %v518_v6 = vadd.f32 %v516_v38, %v508_v39  ;;  %v561_v51 = vstv %s1524_s15  ;;  %v636_v12 = vstv %s1531_s10  ;;  %s1397_s10 = scalar_lea.hbm %s2536_s4, %s1608_s21 }
 0x1ad   : > { %v580_v52 = vrot.slane %v2366_v53, 1  ;;  %v562_v60 = vmul.f32 %v561_v51, %v2092_v43  ;;  %v645_v32 = vrot.slane %v2364_v58, 1  ;;  %v712_v39 = vmul.f32 %v711_v21, %v2092_v43 }
 0x1af   : > { %v573_v1 = vadd.f32 %v571_v56, %v562_v60 }
 0x1b0   : > { %v524_v0 = vpop.permute.xlu1 %523  ;;  %v459_v30 = vpop.permute.xlu0 %458 }
 0x1b1   : > { %v460_v7 = vrot.slane %v459_v30, 1  ;;  %v525_v37 = vrot.slane %v524_v0, 1 }
 0x1b3   : > { %v461_v16 = vsel %vm392_vm11, %v459_v30, %v460_v7  ;;  %v526_v44 = vsel %vm381_vm10, %v524_v0, %v525_v37  ;;  %v581_v0 = vsel %vm359_vm8, %v2366_v53, %v580_v52 }
 0x1b4   : > { %v2372_v9 = vpop.permute.xlu1 %653  ;;  %v589_v10 = vpop.permute.xlu0 %588  ;;  %v463_v23 = vadd.f32 %v461_v16, %v453_v17  ;;  %v528_v47 = vadd.f32 %v526_v44, %v518_v6  ;;  %v583_v4 = vadd.f32 %v581_v0, %v573_v1  ;;  %v646_v17 = vsel %vm348_vm7, %v2364_v58, %v645_v32 }
 0x1b5   : > { %v590_v57 = vrot.slane %v589_v10, 1  ;;  %v655_v14 = vrot.slane %v2372_v9, 1 }
 0x1b7   : > { %v591_v2 = vsel %vm370_vm9, %v589_v10, %v590_v57  ;;  %v637_v10 = vmul.f32 %v636_v12, %v2092_v43  ;;  %v656_v26 = vsel %vm359_vm8, %v2372_v9, %v655_v14 }
 0x1b8   : > { %v469_v18 = vpop.permute.xlu1 %468  ;;  %v2376_v19 = vpop.permute.xlu0 %718  ;;  %v593_v53 = vadd.f32 %v591_v2, %v583_v4 }
 0x1b9   : > { %v470_v22 = vrot.slane %v469_v18, 1  ;;  %v720_v16 = vrot.slane %v2376_v19, 1 }
 0x1bb   : > { %v471_v27 = vsel %vm403_vm12, %v469_v18, %v470_v22  ;;  %v721_v58 = vsel %vm348_vm7, %v2376_v19, %v720_v16 }
 0x1bc   : > { %v473_v29 = vadd.f32 %v471_v27, %v463_v23  ;;  %v599_v33 = vpop.permute.xlu1 %598  ;;  %v534_v34 = vpop.permute.xlu0 %533 }
 0x1bd   : > { %v535_v36 = vrot.slane %v534_v34, 1  ;;  %v600_v30 = vrot.slane %v599_v33, 1 }
 0x1be   : > { %477 = vrot.lane.b32.xlu0 %v473_v29, %s1852_s25 }
 0x1bf   : > { %v536_v46 = vsel %vm392_vm11, %v534_v34, %v535_v36  ;;  %v601_v15 = vsel %vm381_vm10, %v599_v33, %v600_v30  ;;  %v648_v33 = vadd.f32 %v646_v17, %v637_v10 }
 0x1c0   : > { %v2384_v41 = vpop.permute.xlu1 %728  ;;  %v664_v42 = vpop.permute.xlu0 %663  ;;  %v538_v31 = vadd.f32 %v536_v46, %v528_v47  ;;  %v603_v22 = vadd.f32 %v601_v15, %v593_v53  ;;  %v723_v47 = vadd.f32 %v721_v58, %v712_v39 }
 0x1c1   : > { %v665_v18 = vrot.slane %v664_v42, 1  ;;  %v730_v27 = vrot.slane %v2384_v41, 1  ;;  %v658_v36 = vadd.f32 %v656_v26, %v648_v33 }
 0x1c3   : > { %v666_v35 = vsel %vm370_vm9, %v664_v42, %v665_v18  ;;  %v731_v45 = vsel %vm359_vm8, %v2384_v41, %v730_v27 }
 0x1c4   : > { %v544_v48 = vpop.permute.xlu1 %543  ;;  %v2389_v49 = vpop.permute.xlu0 %793 }
 0x1c5   : > { %v545_v54 = vrot.slane %v544_v48, 1  ;;  %v795_v42 = vrot.slane %v2389_v49, 1 }
 0x1c7   : > { %v546_v59 = vsel %vm403_vm12, %v544_v48, %v545_v54  ;;  %v668_v48 = vadd.f32 %v666_v35, %v658_v36  ;;  %v733_v54 = vadd.f32 %v731_v45, %v723_v47  ;;  %v796_v30 = vsel %vm348_vm7, %v2389_v49, %v795_v42 }
 0x1c8   : > { %v548_v55 = vadd.f32 %v546_v59, %v538_v31  ;;  %v674_v62 = vpop.permute.xlu1 %673  ;;  %v609_v63 = vpop.permute.xlu0 %608  ;;  %v786_v31 = vstv %s2413_s16 }
 0x1c9   : > { %v610_v3 = vrot.slane %v609_v63, 1  ;;  %v675_v28 = vrot.slane %v674_v62, 1 }
 0x1ca   : > { %552 = vrot.lane.b32.xlu0 %v548_v55, %s1851_s22  ;;  %s241_s22 = scalar_lea.vmem [#allocation11], %s1500_s28 }
 0x1cb   : > { %v611_v20 = vsel %vm392_vm11, %v609_v63, %v610_v3  ;;  %v676_v46 = vsel %vm381_vm10, %v674_v62, %v675_v28  ;;  %v787_v3 = vmul.f32 %v786_v31, %v2092_v43  ;;  %s1399_s6 = sshll.u32 %s241_s22, 4  ;;  %s1400_s6 = int_to_ptr.vmem [resolvable:$true] %s1399_s6 }
 0x1cc   : > { %v2403_v7 = vpop.permute.xlu1 %803  ;;  %v739_v8 = vpop.permute.xlu0 %738  ;;  %v613_v34 = vadd.f32 %v611_v20, %v603_v22  ;;  %v678_v56 = vadd.f32 %v676_v46, %v668_v48  ;;  %s1765_s16 = scalar_lea.vmem %s1400_s6, 128 }
 0x1cd   : > { %v740_v37 = vrot.slane %v739_v8, 1  ;;  %v805_v41 = vrot.slane %v2403_v7, 1  ;;  %v798_v17 = vadd.f32 %v796_v30, %v787_v3  ;;  %p1766_p1 = scmp.ne.s32.totalorder %s1400_s6, %s1765_s16 }
 0x1cf   : > { %v741_v51 = vsel %vm370_vm9, %v739_v8, %v740_v37  ;;  %v806_v15 = vsel %vm359_vm8, %v2403_v7, %v805_v41  ;;  %p1767_p9 = pnand %p1766_p1, %p2558_p2 }
 0x1d0   : > { %v684_v23 = vpop.permute.xlu1 %683  ;;  %v619_v24 = vpop.permute.xlu0 %618  ;;  %v743_v63 = vadd.f32 %v741_v51, %v733_v54  ;;  %v808_v10 = vadd.f32 %v806_v15, %v798_v17 }
 0x1d1   : > { %v620_v29 = vrot.slane %v619_v24, 1  ;;  %v685_v61 = vrot.slane %v684_v23, 1  ;;  %p1768_p4 = pneg %p1767_p9 }
 0x1d3   : > { %v621_v38 = vsel %vm403_vm12, %v619_v24, %v620_v29  ;;  %v686_v52 = vsel %vm392_vm11, %v684_v23, %v685_v61 }
 0x1d4   : > { %v623_v9 = vadd.f32 %v621_v38, %v613_v34  ;;  %v814_v44 = vpop.permute.xlu1 %813  ;;  %v749_v6 = vpop.permute.xlu0 %748  ;;  %v688_v0 = vadd.f32 %v686_v52, %v678_v56 }
 0x1d5   : > { %v750_v19 = vrot.slane %v749_v6, 1  ;;  %v815_v1 = vrot.slane %v814_v44, 1 }
 0x1d6   : > { %627 = vrot.lane.b32.xlu0 %v623_v9, %s1853_s7 }
 0x1d7   : > { %v751_v60 = vsel %vm381_vm10, %v749_v6, %v750_v19  ;;  %v816_v49 = vsel %vm370_vm9, %v814_v44, %v815_v1 }
 0x1d8   : > { %v694_v57 = vpop.permute.xlu1 %693  ;;  %v759_v59 = vpop.permute.xlu0 %758  ;;  %v753_v4 = vadd.f32 %v751_v60, %v743_v63  ;;  %v818_v26 = vadd.f32 %v816_v49, %v808_v10 }
 0x1d9   : > { %v695_v55 = vrot.slane %v694_v57, 1  ;;  %v760_v62 = vrot.slane %v759_v59, 1 }
 0x1db   : > { %v696_v32 = vsel %vm403_vm12, %v694_v57, %v695_v55  ;;  %v761_v2 = vsel %vm392_vm11, %v759_v59, %v760_v62 }
 0x1dc   : > { %v698_v8 = vadd.f32 %v696_v32, %v688_v0  ;;  %v824_v12 = vpop.permute.xlu1 %823  ;;  %v769_v14 = vpop.permute.xlu0 %768  ;;  %v763_v18 = vadd.f32 %v761_v2, %v753_v4  ;;  %v336_v4 = vld [vmem:[#allocation2] ss:$2 sm:$0x3] }
 0x1dd   : > { %v825_v53 = vrot.slane %v824_v12, 1  ;;  %v770_v16 = vrot.slane %v769_v14, 1 }
 0x1de   : > { %702 = vrot.lane.b32.xlu0 %v698_v8, %s1854_s24  ;;  %v337_v8 = vstv %s335_s30 }
 0x1df   : > { %v771_v20 = vsel %vm403_vm12, %v769_v14, %v770_v16  ;;  %v826_v23 = vsel %vm381_vm10, %v824_v12, %v825_v53  ;;  %v338_v53 = vmul.f32 %v337_v8, %v336_v4 }
 0x1e0   : > { %v773_v43 = vadd.f32 %v771_v20, %v763_v18  ;;  %v834_v21 = vpop.permute.xlu1 %833  ;;  %v1256_v22 = vpop.permute.xlu0 %1255  ;;  %v828_v27 = vadd.f32 %v826_v23, %v818_v26 }
 0x1e1   : > { %v835_v24 = vrot.slane %v834_v21, 1  ;;  %v1257_v9 = vrot.slane %v1256_v22, 1 }
 0x1e2   : > { %777 = vrot.lane.b32.xlu0 %v773_v43, %s1855_s27 }
 0x1e3   : > { %v836_v7 = vsel %vm392_vm11, %v834_v21, %v835_v24  ;;  %v1258_v19 = vsel %vm381_vm10, %v1256_v22, %v1257_v9 }
 0x1e4   : > { %v844_v28 = vpop.permute.xlu1 %843  ;;  %v1204_v29 = vpop.permute.xlu0 %1203  ;;  %v838_v34 = vadd.f32 %v836_v7, %v828_v27  ;;  %v1260_v52 = vadd.f32 %v1258_v19, %v2338_v50  ;;  %v2471_v19 = vld [vmem:[#allocation8 + $0x1] ss:$8 sm:$0x3] }
 0x1e5   : > { %v845_v33 = vrot.slane %v844_v28, 1  ;;  %v1205_v58 = vrot.slane %v1204_v29, 1 }
 0x1e7   : > { %v846_v35 = vsel %vm403_vm12, %v844_v28, %v845_v33  ;;  %v1206_v37 = vsel %vm403_vm12, %v1204_v29, %v1205_v58 }
 0x1e8   : > { %v848_v61 = vadd.f32 %v846_v35, %v838_v34  ;;  %v1208_v38 = vadd.f32 %v1206_v37, %v2323_v11  ;;  %v1318_v36 = vpop.permute.xlu1 %1317  ;;  %v1328_v39 = vpop.permute.xlu0 %1327 }
 0x1e9   : > { %v1319_v44 = vrot.slane %v1318_v36, 1  ;;  %v1329_v47 = vrot.slane %v1328_v39, 1 }
 0x1ea   : > { %852 = vrot.lane.b32.xlu0 %v848_v61, %s1856_s29  ;;  %1210 = vrot.lane.b32.xlu1 %v1208_v38, %s1854_s24 }
 0x1eb   : > { %v1320_v6 = vsel %vm370_vm9, %v1318_v36, %v1319_v44  ;;  %v1330_v31 = vsel %vm381_vm10, %v1328_v39, %v1329_v47  ;;  %v862_v36 = vld [vmem:[#allocation2 + $0x1] ss:$2 sm:$0x3]  ;;  %v863_v39 = vstv %s1552_s9 }
 0x1ec   : > { %v1266_v45 = vpop.permute.xlu1 %1265  ;;  %v1338_v46 = vpop.permute.xlu0 %1337  ;;  %v1322_v42 = vadd.f32 %v1320_v6, %v2317_v5 }
 0x1ed   : > { %v1267_v48 = vrot.slane %v1266_v45, 1  ;;  %v1339_v51 = vrot.slane %v1338_v46, 1 }
 0x1ee   : > { %994 = vrot.lane.b32.xlu0 %v2275_v13, %s1852_s25  ;;  %v1332_v57 = vadd.f32 %v1330_v31, %v1322_v42 }
 0x1ef   : > { %v1268_v11 = vsel %vm392_vm11, %v1266_v45, %v1267_v48  ;;  %v1340_v41 = vsel %vm392_vm11, %v1338_v46, %v1339_v51  ;;  %v407_v51 = vld [vmem:[#allocation8] ss:$8 sm:$0x3] }
 0x1f0   : > { %v1276_v54 = vpop.permute.xlu1 %1275  ;;  %v1270_v59 = vadd.f32 %v1268_v11, %v1260_v52  ;;  %v1342_v62 = vadd.f32 %v1340_v41, %v1332_v57  ;;  %v346_v32 = vpop.permute.xlu0 %345  ;;  %v864_v11 = vmul.f32 %v863_v39, %v862_v36  ;;  %v550_v41 = vld [vmem:[#allocation8 + $0x2] ss:$8 sm:$0x3] }
 0x1f1   : > { %v1277_v56 = vrot.slane %v1276_v54, 1  ;;  %v347_v2 = vrot.slane %v346_v32, 1 }
 0x1f2   : > { %1138 = vrot.lane.b32.xlu0 %v2349_v40, %s1853_s7  ;;  %s1857_s7 = smov [#allocation11]  }
 0x1f3   : > { %v1278_v5 = vsel %vm403_vm12, %v1276_v54, %v1277_v56  ;;  %v349_v15 = vsel %vm348_vm7, %v346_v32, %v347_v2  ;;  %v700_v2 = vld [vmem:[#allocation8 + $0x4] ss:$8 sm:$0x3] }
 0x1f4   : > { %v1280_v60 = vadd.f32 %v1278_v5, %v1270_v59  ;;  %v1348_v13 = vpop.permute.xlu1 %1347  ;;  %v368_v3 = vpop.permute.xlu0 %367  ;;  %v351_v17 = vadd.f32 %v349_v15, %v338_v53  ;;  %v775_v15 = vld [vmem:[#allocation8 + $0x5] ss:$8 sm:$0x3] }
 0x1f5   : > { %v1349_v55 = vrot.slane %v1348_v13, 1  ;;  %v369_v49 = vrot.slane %v368_v3, 1 }
 0x1f6   : > { %1282 = vrot.lane.b32.xlu0 %v1280_v60, %s1855_s27 }
 0x1f7   : > { %v1350_v50 = vsel %vm403_vm12, %v1348_v13, %v1349_v55  ;;  %v371_v22 = vsel %vm370_vm9, %v368_v3, %v369_v49 }
 0x1f8   : > { %v1352_v63 = vadd.f32 %v1350_v50, %v1342_v62  ;;  %v357_v0 = vpop.permute.xlu1 %356  ;;  %v390_v18 = vpop.permute.xlu0 %389  ;;  %v625_v62 = vld [vmem:[#allocation8 + $0x3] ss:$8 sm:$0x3] }
 0x1f9   : > { %v358_v12 = vrot.slane %v357_v0, 1  ;;  %v391_v27 = vrot.slane %v390_v18, 1 }
 0x1fa   : > { %1354 = vrot.lane.b32.xlu1 %v1352_v63, %s1856_s29 }
 0x1fb   : > { %v360_v16 = vsel %vm359_vm8, %v357_v0, %v358_v12  ;;  %v393_v58 = vsel %vm392_vm11, %v390_v18, %v391_v27 }
 0x1fc   : > { %v379_v30 = vpop.permute.xlu1 %378  ;;  %v362_v20 = vadd.f32 %v360_v16, %v351_v17 }
 0x1fd   : > { %v380_v43 = vrot.slane %v379_v30, 1 }
 0x1fe   : > { %v373_v23 = vadd.f32 %v371_v22, %v362_v20 }
 0x1ff   : > { %v382_v24 = vsel %vm381_vm10, %v379_v30, %v380_v43 }
 0x200   : > { %v401_v1 = vpop.permute.xlu1 %400  ;;  %v384_v28 = vadd.f32 %v382_v24, %v373_v23  ;;  %v850_v23 = vld [vmem:[#allocation8 + $0x6] ss:$8 sm:$0x3] }
 0x201   : > { %v402_v29 = vrot.slane %v401_v1, 1 }
 0x202   : > { %v395_v37 = vadd.f32 %v393_v58, %v384_v28 }
 0x203   : > { %v404_v38 = vsel %vm403_vm12, %v401_v1, %v402_v29 }
 0x204   : > { %v872_v40 = vpop.permute.xlu1 %871  ;;  %v406_v42 = vadd.f32 %v404_v38, %v395_v37 }
 0x205   : > { %v873_v34 = vrot.slane %v872_v40, 1 }
 0x206   : > { %v408_v0 = vmul.f32 %v407_v51, %v406_v42 }
 0x207   : > { %v874_v45 = vsel %vm348_vm7, %v872_v40, %v873_v34 }
 0x208   : > { %v882_v14 = vpop.permute.xlu1 %881  ;;  %v876_v57 = vadd.f32 %v874_v45, %v864_v11 }
 0x209   : > { %v883_v9 = vrot.slane %v882_v14, 1 }
 0x20b   : > { %v884_v52 = vsel %vm359_vm8, %v882_v14, %v883_v9 }
 0x20c   : > { %v892_v10 = vpop.permute.xlu1 %891  ;;  %v886_v30 = vadd.f32 %v884_v52, %v876_v57 }
 0x20d   : > { %v893_v46 = vrot.slane %v892_v10, 1 }
 0x20f   : > { %v894_v13 = vsel %vm370_vm9, %v892_v10, %v893_v46 }
 0x210   : > { %v902_v26 = vpop.permute.xlu1 %901  ;;  %v896_v4 = vadd.f32 %v894_v13, %v886_v30 }
 0x211   : > { %v903_v54 = vrot.slane %v902_v26, 1 }
 0x213   : > { %v904_v32 = vsel %vm381_vm10, %v902_v26, %v903_v54 }
 0x214   : > { %v912_v61 = vpop.permute.xlu1 %911  ;;  %v906_v16 = vadd.f32 %v904_v32, %v896_v4  ;;  %v1374_v32 = vsub.s32 0, %v2025_v25 }
 0x215   : > { %v913_v55 = vrot.slane %v912_v61, 1 }
 0x217   : > { %v914_v14 = vsel %vm392_vm11, %v912_v61, %v913_v55 }
 0x218   : > { %v922_v59 = vpop.permute.xlu1 %921  ;;  %v916_v20 = vadd.f32 %v914_v14, %v906_v16 }
 0x219   : > { %v923_v40 = vrot.slane %v922_v59, 1 }
 0x21b   : > { %v924_v49 = vsel %vm403_vm12, %v922_v59, %v923_v40  ;;  %v1378_v40 = vsub.s32 1, %v2025_v25 }
 0x21c   : > { %v1067_v10 = vpop.permute.xlu1 %1066  ;;  %v926_v26 = vadd.f32 %v924_v49, %v916_v20 }
 0x21d   : > { %v1068_v27 = vrot.slane %v1067_v10, 1 }
 0x21e   : > { %v927_v37 = vmul.f32 %v926_v26, %v407_v51 }
 0x21f   : > { %v1069_v38 = vsel %vm555_vm14, %v1067_v10, %v1068_v27 }
 0x220   : > { %v1071_v46 = vmul.f32 %v1069_v38, %v550_v41 }
 0x230   : > { %v478_v21 = vpop.permute.xlu0 %477 }
 0x231   : > { %v479_v35 = vrot.slane %v478_v21, 1 }
 0x233   : > { %v481_v47 = vsel %vm480_vm13, %v478_v21, %v479_v35 }
 0x234   : > { %v483_v5 = vmul.f32 %v481_v47, %v2471_v19 }
 0x236   : > { %v484_v8 = vadd.f32 %v483_v5, %v408_v0 }
 0x23c   : > { %v553_v7 = vpop.permute.xlu0 %552 }
 0x23d   : > { %v554_v44 = vrot.slane %v553_v7, 1 }
 0x23f   : > { %v556_v31 = vsel %vm555_vm14, %v553_v7, %v554_v44 }
 0x240   : > { %v558_v1 = vmul.f32 %v556_v31, %v550_v41 }
 0x242   : > { %v559_v17 = vadd.f32 %v558_v1, %v484_v8  ;;  %v1370_v8 = vld [vmem:[%s2010_s8] sm:$0xff]  ;;  %s1769_s8 = sshll.u32 %s1857_s7, 4  ;;  %s1770_s8 = int_to_ptr.vmem [resolvable:$false] %s1769_s8 }
 0x243   : > { %s1771_s3 = scalar_lea.vmem %s1770_s8, 256  ;;  %p1772_p6 = scmp.lt.s32.totalorder %s1400_s6, %s1770_s8 }
 0x244   : > { %p1773_p12 = scmp.lt.s32.totalorder %s1771_s3, %s1765_s16 }
 0x246   : > { %p1774_p3 = por %p1773_p12, %p1772_p6 }
 0x248   : > { %v628_v33 = vpop.permute.xlu0 %627  ;;  %p1775_p7 = pnand %p1774_p3, %p1768_p4 }
 0x249   : > { %v629_v48 = vrot.slane %v628_v33, 1 }
 0x24b   : > { %v631_v50 = vsel %vm630_vm15, %v628_v33, %v629_v48 }
 0x24c   : > { %v633_v12 = vmul.f32 %v631_v50, %v625_v62  ;;  %v1362_v50 = vstv %s1361_s12 }
 0x24e   : > { %v634_v43 = vadd.f32 %v633_v12, %v559_v17 }
 0x250   : > { %v703_v6 = vpop.permute.xlu0 %702 }
 0x251   : > { %v704_v56 = vrot.slane %v703_v6, 1 }
 0x253   : > { %v706_v3 = vsel %vm705_vm0, %v703_v6, %v704_v56 }
 0x254   : > { %v778_v60 = vpop.permute.xlu0 %777  ;;  %v708_v18 = vmul.f32 %v706_v3, %v700_v2 }
 0x255   : > { %v779_v63 = vrot.slane %v778_v60, 1 }
 0x256   : > { %v709_v7 = vadd.f32 %v708_v18, %v634_v43 }
 0x257   : > { %v781_v53 = vsel %vm780_vm1, %v778_v60, %v779_v63 }
 0x258   : > { %v783_v21 = vmul.f32 %v781_v53, %v775_v15 }
 0x25a   : > { %v784_v29 = vadd.f32 %v783_v21, %v709_v7 }
 0x25c   : > { %v853_v22 = vpop.permute.xlu0 %852  ;;  %v1211_v33 = vpop.permute.xlu1 %1210 }
 0x25d   : > { %v854_v24 = vrot.slane %v853_v22, 1  ;;  %v1212_v36 = vrot.slane %v1211_v33, 1 }
 0x25f   : > { %v856_v28 = vsel %vm855_vm2, %v853_v22, %v854_v24  ;;  %v1213_v48 = vsel %vm705_vm0, %v1211_v33, %v1212_v36 }
 0x260   : > { %v858_v58 = vmul.f32 %v856_v28, %v850_v23  ;;  %v995_v34 = vpop.permute.xlu0 %994  ;;  %v1215_v31 = vmul.f32 %v1213_v48, %v700_v2 }
 0x261   : > { %v996_v35 = vrot.slane %v995_v34, 1 }
 0x262   : > { %v859_v61 = vadd.f32 %v858_v58, %v784_v29 }
 0x263   : > { %v997_v39 = vsel %vm480_vm13, %v995_v34, %v996_v35 }
 0x264   : > { %v928_v9 = vadd.f32 %v927_v37, %v859_v61  ;;  %v999_v44 = vmul.f32 %v997_v39, %v2471_v19  ;;  %v1139_v6 = vpop.permute.xlu0 %1138 }
 0x265   : > { %v1140_v45 = vrot.slane %v1139_v6, 1 }
 0x266   : > { %v1000_v47 = vadd.f32 %v999_v44, %v928_v9 }
 0x267   : > { %v1141_v42 = vsel %vm630_vm15, %v1139_v6, %v1140_v45 }
 0x268   : > { %v1072_v11 = vadd.f32 %v1071_v46, %v1000_v47  ;;  %v1143_v52 = vmul.f32 %v1141_v42, %v625_v62  ;;  %v1283_v51 = vpop.permute.xlu0 %1282 }
 0x269   : > { %v1284_v54 = vrot.slane %v1283_v51, 1 }
 0x26a   : > { %v1144_v56 = vadd.f32 %v1143_v52, %v1072_v11 }
 0x26b   : > { %v1285_v57 = vsel %vm780_vm1, %v1283_v51, %v1284_v54 }
 0x26c   : > { %v1216_v59 = vadd.f32 %v1215_v31, %v1144_v56  ;;  %v1287_v5 = vmul.f32 %v1285_v57, %v775_v15  ;;  %v1355_v19 = vpop.permute.xlu1 %1354 }
 0x26d   : > { %v1356_v60 = vrot.slane %v1355_v19, 1 }
 0x26e   : > { %v1288_v13 = vadd.f32 %v1287_v5, %v1216_v59 }
 0x26f   : > { %v1357_v41 = vsel %vm855_vm2, %v1355_v19, %v1356_v60 }
 0x270   : > { %v1359_v55 = vmul.f32 %v1357_v41, %v850_v23 }
 0x272   : > { %v1360_v62 = vadd.f32 %v1359_v55, %v1288_v13 }
 0x274   : > { %v1363_v63 = vadd.f32 %v1362_v50, %v1360_v62 }
 0x276   : > { %v1601_v0 = vmul.f32 -1.442695, %v1363_v63 }
 0x278   : > { %1692 = vpow2.f32 %v1601_v0 }
 0x285   : > { %v1693_v30 = vpop.eup %1692 }
 0x286   : > { %v1367_v1 = vadd.f32 1.0, %v1693_v30 }
 0x288   : > { %1694 = vrcp.f32 %v1367_v1 }
 0x295   : > { %v1695_v2 = vpop.eup %1694 }
 0x296   : > { %v1375_v3 = vrot.slane %v1695_v2, %v1374_v32  ;;  %v1379_v4 = vrot.slane %v1695_v2, %v1378_v40 }
 0x298   : > { %v1380_v12 = vcombine.low %v1375_v3, %v1379_v4 }
 0x29a   : > { %v1382_v14 = vmul.f32 %v1380_v12, %v1370_v8 }
 0x29c   : > { %1383 = vst [vmem:[%s241_s22] sm:$0xff] %v1382_v14 }
 0x29d   : > { %1778 = shalt.err (!%p1775_p7)
}
 0x29e   : > { %s1779_s28 = scalar_lea.hbm %s1397_s10, 128  ;;  %s1783_s27 = scalar_lea.hbm %s2536_s4, 256 }
 0x29f   : > { %p1780_p10 = scmp.ne.s32.totalorder %s1397_s10, %s1779_s28  ;;  %p1784_p5 = scmp.lt.s32.totalorder %s1397_s10, %s2536_s4 }
 0x2a0   : > { %p1785_p13 = scmp.lt.s32.totalorder %s1783_s27, %s1779_s28 }
 0x2a1   : > { %p1781_p8 = pnand %p1780_p10, %p2558_p2 }
 0x2a2   : > { %p1786_p0 = por %p1785_p13, %p1784_p5 }
 0x2a3   : > { %p1782_p11 = pneg %p1781_p8 }
 0x2a5   : > { %p1787_p1 = pnand %p1786_p0, %p1782_p11 }
 0x2a7   : > { %1790 = shalt.err (!%p1787_p1)
}
 0x2a8   : > { %1619 = dma.vmem_to_hbm [thread:$0]  (%p2558_p2), %s1400_s6, 128, %s1397_s10, %s1385_s11  }
 0x2a9 PF: > { %s1411_s9 = sand.u32 1, %s1825_s17   ;;  %p2559_p9 = scmp.ne.s32.totalorder %s2542_s23, 0 }
 0x2aa   : > { %p2560_p4 = scmp.ge.s32.totalorder %s1837_s20, 2  ;;  %s1412_s12 = scalar_lea.sflag [#allocation6], %s1411_s9 }
 0x2ac   : > { %p1633_p6 = pnand %p2560_p4, %p2559_p9 }
 0x2ae   : > { %p1634_p12 = pneg %p1633_p6 }
 0x2b0   : > { %1820 = dma.done.wait (%p1634_p12), %s1412_s12, 128  }
 0x2b1   : > { %1822 = vsyncadd (%p1634_p12), %s1412_s12, 4294967168  ;;  %p20_p3 = scmp.ge.s32.totalorder %s1943_s5, 4   ;;  %s2561_s17 = smov %s1829_s18 }
 0x2b2   : > { %s2562_s18 = smov %s1833_s19  ;;  %s2563_s19 = smov %s1967_s13 }
 0x2b3   : > { %s2564_s20 = smov %s1943_s5  ;;  %22 = sbr.rel (!%p20_p3) target bundleno = 9 (0x9), region = 98 }
 0x2b8   :  { %1417 = vsyncpa [#allocation5], 1 }
 0x2b9   :  { %1419 = vsyncpa [#allocation5 + $0x1], 1 }
 0x2ba   :  { %1420 = vsyncpa [#allocation9], 1 }
 0x2bb   :  { %1421 = vsyncpa [#allocation6], 1 }
 0x2bc   :  { %1423 = vsyncpa [#allocation6 + $0x1], 1 }
 0x2bd   :  { %1424 = vsyncpa [#allocation7], 1 }
 0x2be   :  { %1426 = vsyncpa [#allocation7 + $0x1], 1 }

</bundles_post_ra>
